<compile_context>
chip_gen: v7x
topology: tpu7x:2x2x1
jax: 0.10.0
libtpu: 0.0.40
codegen_flags: <defaults>
</compile_context>

<pallas_src>
import functools
import math

import jax
import jax.numpy as jnp
from jax import lax
from jax.experimental import pallas as pl
from jax.experimental.pallas import tpu as pltpu


def mha_kernel(q_ref, k_ref, v_ref,
               wq_ref, bq_ref, wk_ref, bk_ref,
               wv_ref, bv_ref, wo_ref, bo_ref,
               o_ref,
               kc_ref, vc_ref, ctx_ref,
               *, num_heads, head_dim):
    cdtype = q_ref.dtype                       # native compute dtype (f32 / bf16)
    scale = 1.0 / math.sqrt(head_dim)

    # ---- K/V projections: once per batch element, cached across q-tiles. ----
    @pl.when(pl.program_id(1) == 0)
    def _project_kv():
        kc_ref[...] = (jnp.dot(k_ref[...], wk_ref[...],
                               preferred_element_type=jnp.float32)
                       + bk_ref[...].astype(jnp.float32)).astype(cdtype)
        vc_ref[...] = (jnp.dot(v_ref[...], wv_ref[...],
                               preferred_element_type=jnp.float32)
                       + bv_ref[...].astype(jnp.float32)).astype(cdtype)

    # ---- Q projection for this query tile (1/sqrt(D) folded in once). ----
    Qc = ((jnp.dot(q_ref[...], wq_ref[...], preferred_element_type=jnp.float32)
           + bq_ref[...].astype(jnp.float32)) * scale).astype(cdtype)

    # ---- Per-head attention; head outputs land in a lane-contiguous (TQ, E)
    # context scratch so fc_out runs as a single K=E MXU matmul below. ----
    for h in range(num_heads):                 # small-H: static unroll is fine
        lo = h * head_dim
        qh = Qc[:, lo:lo + head_dim]           # (TQ, D)
        kh = kc_ref[:, lo:lo + head_dim]       # (Sk, D)
        vh = vc_ref[:, lo:lo + head_dim]       # (Sk, D)

        # Contract last dims of both operands: no explicit kh.T materialized.
        s = lax.dot_general(qh, kh,
                            dimension_numbers=(((1,), (1,)), ((), ())),
                            preferred_element_type=jnp.float32)   # (TQ, Sk) f32
        s = s - jnp.max(s, axis=-1, keepdims=True)
        p = jnp.exp(s)
        p = p / jnp.sum(p, axis=-1, keepdims=True)        # exact normalization

        oh = jnp.dot(p.astype(cdtype), vh,
                     preferred_element_type=jnp.float32)  # (TQ, D) f32
        ctx_ref[:, lo:lo + head_dim] = oh.astype(cdtype)

    # ---- Fused output projection: one (TQ,E) @ (E,E) matmul per tile. ----
    out = (jnp.dot(ctx_ref[...], wo_ref[...], preferred_element_type=jnp.float32)
           + bo_ref[...].astype(jnp.float32))
    o_ref[...] = out.astype(o_ref.dtype)


def _pick_q_tile(seq_len_q, q_tile):
    """Largest divisor of Sq that is a multiple of 8 and <= q_tile."""
    if seq_len_q % 8 != 0:
        return seq_len_q                       # tiny / odd shapes: one full tile
    best = 8
    for t in range(8, min(q_tile, seq_len_q) + 1, 8):
        if seq_len_q % t == 0:
            best = t
    return best


def _vmem_limit_bytes():
    """Generation-aware VMEM budget: ~3/4 of physical, capped, with headroom."""
    try:
        physical = int(pltpu.get_tpu_info().vmem_capacity_bytes)
        return max(32 * 1024 * 1024, min(physical * 3 // 4, 112 * 1024 * 1024))
    except Exception:
        return 64 * 1024 * 1024


def multi_head_attention(query, key, value, params, *, num_heads, q_tile=128):
    N, Sq, E = query.shape
    _, Sk, _ = key.shape
    head_dim = E // num_heads
    assert head_dim * num_heads == E, "embed_dim must be divisible by num_heads"

    dtype = query.dtype
    TQ = _pick_q_tile(Sq, q_tile)
    num_q_tiles = Sq // TQ

    # PyTorch (out,in) weights -> (in,out); cast params to the compute dtype so
    # bf16 inputs use true bf16 MXU matmuls (f32 accumulation kept in-kernel).
    wq_t = params["wq"].T.astype(dtype)
    wk_t = params["wk"].T.astype(dtype)
    wv_t = params["wv"].T.astype(dtype)
    wo_t = params["wo"].T.astype(dtype)
    bq = params["bq"].reshape(1, E).astype(dtype)
    bk = params["bk"].reshape(1, E).astype(dtype)
    bv = params["bv"].reshape(1, E).astype(dtype)
    bo = params["bo"].reshape(1, E).astype(dtype)

    kernel = functools.partial(mha_kernel, num_heads=num_heads, head_dim=head_dim)

    def build(single_buffer_weights):
        if single_buffer_weights:
            def const_spec(shape):
                # Grid-invariant operands: single-buffer to halve their VMEM.
                return pl.BlockSpec(shape, lambda b, t: (0,) * len(shape),
                                    pipeline_mode=pl.Buffered(1))
        else:
            def const_spec(shape):
                return pl.BlockSpec(shape, lambda b, t: (0,) * len(shape))

        w_spec = const_spec((E, E))
        b_spec = const_spec((1, E))
        # Squeezed leading batch dim -> kernel sees lane-dense (S, E) refs.
        q_spec = pl.BlockSpec((None, TQ, E), lambda b, t: (b, t, 0))
        kv_spec = pl.BlockSpec((None, Sk, E), lambda b, t: (b, 0, 0))
        out_spec = pl.BlockSpec((None, TQ, E), lambda b, t: (b, t, 0))

        return pl.pallas_call(
            kernel,
            out_shape=jax.ShapeDtypeStruct((N, Sq, E), dtype),
            grid_spec=pltpu.PrefetchScalarGridSpec(
                num_scalar_prefetch=0,
                grid=(N, num_q_tiles),
                in_specs=[
                    q_spec, kv_spec, kv_spec,   # q, k, v
                    w_spec, b_spec,             # Wq, bq
                    w_spec, b_spec,             # Wk, bk
                    w_spec, b_spec,             # Wv, bv
                    w_spec, b_spec,             # Wo, bo
                ],
                out_specs=out_spec,
                scratch_shapes=[
                    pltpu.VMEM((Sk, E), dtype),   # cached projected K (per batch)
                    pltpu.VMEM((Sk, E), dtype),   # cached projected V (per batch)
                    pltpu.VMEM((TQ, E), dtype),   # per-tile multi-head context
                ],
            ),
            compiler_params=pltpu.CompilerParams(
                # batch 'parallel' (megacore sharding on v7x); q-tile 'arbitrary'
                # so the per-batch K/V scratch cache is honored sequentially.
                dimension_semantics=("parallel", "arbitrary"),
                vmem_limit_bytes=_vmem_limit_bytes(),
            ),
        )

    args = (query, key, value, wq_t, bq, wk_t, bk, wv_t, bv, wo_t, bo)
    try:
        return build(True)(*args)
    except Exception:
        # pipeline_mode=pl.Buffered(1) unsupported on this jax version/backend:
        # rebuild with default double-buffered weights (semantics unchanged).
        return build(False)(*args)


def reference_mha(query, key, value, params, *, num_heads):
    """Pure-JAX reference mirroring the PyTorch forward."""
    N, Sq, E = query.shape
    Sk = key.shape[1]
    D = E // num_heads

    def linear(x, w, b):  # PyTorch: x @ W.T + b
        return jnp.einsum("nse,oe->nso", x, w) + b

    Q = linear(query, params["wq"], params["bq"])
    K = linear(key, params["wk"], params["bk"])
    V = linear(value, params["wv"], params["bv"])

    Q = Q.reshape(N, Sq, num_heads, D).transpose(0, 2, 1, 3)
    K = K.reshape(N, Sk, num_heads, D).transpose(0, 2, 1, 3)
    V = V.reshape(N, Sk, num_heads, D).transpose(0, 2, 1, 3)

    scores = jnp.einsum("nhqd,nhkd->nhqk", Q, K) / math.sqrt(D)
    attn = jax.nn.softmax(scores, axis=-1)
    out = jnp.einsum("nhqk,nhkd->nhqd", attn, V)
    out = out.transpose(0, 2, 1, 3).reshape(N, Sq, E)
    return linear(out, params["wo"], params["bo"])


if __name__ == "__main__":
    # Small deterministic config (head_dim = 8).
    N, SEQ, EMBED, HEADS = 2, 8, 32, 4

    key0 = jax.random.PRNGKey(0)
    keys = jax.random.split(key0, 11)

    scale = 1.0 / math.sqrt(EMBED)
    params = {
        "wq": jax.random.uniform(keys[0], (EMBED, EMBED), jnp.float32, -scale, scale),
        "bq": jax.random.uniform(keys[1], (EMBED,), jnp.float32, -scale, scale),
        "wk": jax.random.uniform(keys[2], (EMBED, EMBED), jnp.float32, -scale, scale),
        "bk": jax.random.uniform(keys[3], (EMBED,), jnp.float32, -scale, scale),
        "wv": jax.random.uniform(keys[4], (EMBED, EMBED), jnp.float32, -scale, scale),
        "bv": jax.random.uniform(keys[5], (EMBED,), jnp.float32, -scale, scale),
        "wo": jax.random.uniform(keys[6], (EMBED, EMBED), jnp.float32, -scale, scale),
        "bo": jax.random.uniform(keys[7], (EMBED,), jnp.float32, -scale, scale),
    }

    query = jax.random.normal(keys[8], (N, SEQ, EMBED), jnp.float32)
    key_in = jax.random.normal(keys[9], (N, SEQ, EMBED), jnp.float32)
    value = jax.random.normal(keys[10], (N, SEQ, EMBED), jnp.float32)

    out = multi_head_attention(query, key_in, value, params, num_heads=HEADS)
    out = jax.block_until_ready(out)

    ref = reference_mha(query, key_in, value, params, num_heads=HEADS)
    assert out.shape == (N, SEQ, EMBED)
    assert jnp.allclose(out, ref, atol=1e-4, rtol=1e-4), "mismatch vs pure-JAX reference"

    print("KERNEL_OK")
</pallas_src>

<mosaic_0001>
module attributes {stable_mosaic.version = 11 : i64} {
  func.func @mha_kernel(%arg0: i32, %arg1: i32, %arg2: memref<1x8x32xf32, #tpu.memory_space<vmem>>, %arg3: memref<1x8x32xf32, #tpu.memory_space<vmem>>, %arg4: memref<1x8x32xf32, #tpu.memory_space<vmem>>, %arg5: memref<32x32xf32, #tpu.memory_space<vmem>>, %arg6: memref<1x32xf32, #tpu.memory_space<vmem>>, %arg7: memref<32x32xf32, #tpu.memory_space<vmem>>, %arg8: memref<1x32xf32, #tpu.memory_space<vmem>>, %arg9: memref<32x32xf32, #tpu.memory_space<vmem>>, %arg10: memref<1x32xf32, #tpu.memory_space<vmem>>, %arg11: memref<32x32xf32, #tpu.memory_space<vmem>>, %arg12: memref<1x32xf32, #tpu.memory_space<vmem>>, %arg13: memref<1x8x32xf32, #tpu.memory_space<vmem>>, %arg14: memref<8x32xf32, #tpu.memory_space<vmem>>, %arg15: memref<8x32xf32, #tpu.memory_space<vmem>>, %arg16: memref<8x32xf32, #tpu.memory_space<vmem>>) attributes {dimension_semantics = [#tpu.dimension_semantics<parallel>, #tpu.dimension_semantics<arbitrary>], iteration_bounds = array<i64: 2, 1>, scalar_prefetch = 0 : i64, scratch_operands = 3 : i64, tpu.core_type = #tpu.core_type<tc>, window_params = [{transform_indices = @transform_0, window_bounds = array<i64: 1, 8, 32>}, {transform_indices = @transform_1, window_bounds = array<i64: 1, 8, 32>}, {transform_indices = @transform_2, window_bounds = array<i64: 1, 8, 32>}, {pipeline_mode = #tpu.pipeline_mode<synchronous>, transform_indices = @transform_3, window_bounds = array<i64: 32, 32>}, {pipeline_mode = #tpu.pipeline_mode<synchronous>, transform_indices = @transform_4, window_bounds = array<i64: 1, 32>}, {pipeline_mode = #tpu.pipeline_mode<synchronous>, transform_indices = @transform_5, window_bounds = array<i64: 32, 32>}, {pipeline_mode = #tpu.pipeline_mode<synchronous>, transform_indices = @transform_6, window_bounds = array<i64: 1, 32>}, {pipeline_mode = #tpu.pipeline_mode<synchronous>, transform_indices = @transform_7, window_bounds = array<i64: 32, 32>}, {pipeline_mode = #tpu.pipeline_mode<synchronous>, transform_indices = @transform_8, window_bounds = array<i64: 1, 32>}, {pipeline_mode = #tpu.pipeline_mode<synchronous>, transform_indices = @transform_9, window_bounds = array<i64: 32, 32>}, {pipeline_mode = #tpu.pipeline_mode<synchronous>, transform_indices = @transform_10, window_bounds = array<i64: 1, 32>}, {transform_indices = @transform_11, window_bounds = array<i64: 1, 8, 32>}]} {
    %c0_i32 = arith.constant 0 : i32
    %0 = arith.cmpi eq, %arg1, %c0_i32 : i32
    %1 = arith.extui %0 : i1 to i32
    %c0_i32_0 = arith.constant 0 : i32
    %2 = arith.cmpi ne, %1, %c0_i32_0 : i32
    scf.if %2 {
      %c0_55 = arith.constant 0 : index
      %c0_56 = arith.constant 0 : index
      %c0_57 = arith.constant 0 : index
      %81 = vector.load %arg3[%c0_55, %c0_56, %c0_57] : memref<1x8x32xf32, #tpu.memory_space<vmem>>, vector<1x8x32xf32>
      %82 = vector.shape_cast %81 : vector<1x8x32xf32> to vector<8x32xf32>
      %c0_58 = arith.constant 0 : index
      %c0_59 = arith.constant 0 : index
      %83 = vector.load %arg7[%c0_58, %c0_59] : memref<32x32xf32, #tpu.memory_space<vmem>>, vector<32x32xf32>
      %cst_60 = arith.constant dense<0.000000e+00> : vector<8x32xf32>
      %84 = tpu.matmul %82, %83, %cst_60 {dimension_numbers = #tpu.dot_dimension_numbers<[1], [0], [0], [1], [0, 0, 1, 1], [], []>} : vector<8x32xf32>, vector<32x32xf32>, vector<8x32xf32> -> vector<8x32xf32>
      %c0_61 = arith.constant 0 : index
      %c0_62 = arith.constant 0 : index
      %85 = vector.load %arg8[%c0_61, %c0_62] : memref<1x32xf32, #tpu.memory_space<vmem>>, vector<1x32xf32>
      %86 = vector.broadcast %85 : vector<1x32xf32> to vector<8x32xf32>
      %87 = arith.addf %84, %86 : vector<8x32xf32>
      %c0_63 = arith.constant 0 : index
      %c0_64 = arith.constant 0 : index
      %88 = vector.load %arg14[%c0_63, %c0_64] : memref<8x32xf32, #tpu.memory_space<vmem>>, vector<8x32xf32>
      tpu.vector_store %arg14[%c0_63, %c0_64], %87 {strides = array<i32>} : memref<8x32xf32, #tpu.memory_space<vmem>>, vector<8x32xf32>,
      %c0_65 = arith.constant 0 : index
      %c0_66 = arith.constant 0 : index
      %c0_67 = arith.constant 0 : index
      %89 = vector.load %arg4[%c0_65, %c0_66, %c0_67] : memref<1x8x32xf32, #tpu.memory_space<vmem>>, vector<1x8x32xf32>
      %90 = vector.shape_cast %89 : vector<1x8x32xf32> to vector<8x32xf32>
      %c0_68 = arith.constant 0 : index
      %c0_69 = arith.constant 0 : index
      %91 = vector.load %arg9[%c0_68, %c0_69] : memref<32x32xf32, #tpu.memory_space<vmem>>, vector<32x32xf32>
      %cst_70 = arith.constant dense<0.000000e+00> : vector<8x32xf32>
      %92 = tpu.matmul %90, %91, %cst_70 {dimension_numbers = #tpu.dot_dimension_numbers<[1], [0], [0], [1], [0, 0, 1, 1], [], []>} : vector<8x32xf32>, vector<32x32xf32>, vector<8x32xf32> -> vector<8x32xf32>
      %c0_71 = arith.constant 0 : index
      %c0_72 = arith.constant 0 : index
      %93 = vector.load %arg10[%c0_71, %c0_72] : memref<1x32xf32, #tpu.memory_space<vmem>>, vector<1x32xf32>
      %94 = vector.broadcast %93 : vector<1x32xf32> to vector<8x32xf32>
      %95 = arith.addf %92, %94 : vector<8x32xf32>
      %c0_73 = arith.constant 0 : index
      %c0_74 = arith.constant 0 : index
      %96 = vector.load %arg15[%c0_73, %c0_74] : memref<8x32xf32, #tpu.memory_space<vmem>>, vector<8x32xf32>
      tpu.vector_store %arg15[%c0_73, %c0_74], %95 {strides = array<i32>} : memref<8x32xf32, #tpu.memory_space<vmem>>, vector<8x32xf32>,
    } else {
    }
    %c0 = arith.constant 0 : index
    %c0_1 = arith.constant 0 : index
    %c0_2 = arith.constant 0 : index
    %3 = vector.load %arg2[%c0, %c0_1, %c0_2] : memref<1x8x32xf32, #tpu.memory_space<vmem>>, vector<1x8x32xf32>
    %4 = vector.shape_cast %3 : vector<1x8x32xf32> to vector<8x32xf32>
    %c0_3 = arith.constant 0 : index
    %c0_4 = arith.constant 0 : index
    %5 = vector.load %arg5[%c0_3, %c0_4] : memref<32x32xf32, #tpu.memory_space<vmem>>, vector<32x32xf32>
    %cst = arith.constant dense<0.000000e+00> : vector<8x32xf32>
    %6 = tpu.matmul %4, %5, %cst {dimension_numbers = #tpu.dot_dimension_numbers<[1], [0], [0], [1], [0, 0, 1, 1], [], []>} : vector<8x32xf32>, vector<32x32xf32>, vector<8x32xf32> -> vector<8x32xf32>
    %c0_5 = arith.constant 0 : index
    %c0_6 = arith.constant 0 : index
    %7 = vector.load %arg6[%c0_5, %c0_6] : memref<1x32xf32, #tpu.memory_space<vmem>>, vector<1x32xf32>
    %8 = vector.broadcast %7 : vector<1x32xf32> to vector<8x32xf32>
    %9 = arith.addf %6, %8 : vector<8x32xf32>
    %cst_7 = arith.constant 0.353553385 : f32
    %10 = vector.broadcast %cst_7 : f32 to vector<8x32xf32>
    %11 = arith.mulf %9, %10 : vector<8x32xf32>
    %12 = vector.extract_strided_slice %11 {offsets = [0, 0], sizes = [8, 8], strides = [1, 1]} : vector<8x32xf32> to vector<8x8xf32>
    %c0_8 = arith.constant 0 : index
    %c0_9 = arith.constant 0 : index
    %13 = vector.load %arg14[%c0_8, %c0_9] : memref<8x32xf32, #tpu.memory_space<vmem>>, vector<8x8xf32>
    %c0_10 = arith.constant 0 : index
    %c0_11 = arith.constant 0 : index
    %14 = vector.load %arg15[%c0_10, %c0_11] : memref<8x32xf32, #tpu.memory_space<vmem>>, vector<8x8xf32>
    %cst_12 = arith.constant dense<0.000000e+00> : vector<8x8xf32>
    %15 = tpu.matmul %12, %13, %cst_12 {dimension_numbers = #tpu.dot_dimension_numbers<[1], [1], [0], [0], [0, 0, 1, 0], [], []>} : vector<8x8xf32>, vector<8x8xf32>, vector<8x8xf32> -> vector<8x8xf32>
    %cst_13 = arith.constant dense<0xFF800000> : vector<8xf32>
    %16 = vector.multi_reduction <maximumf>, %15, %cst_13 [1] : vector<8x8xf32> to vector<8xf32>
    %17 = vector.shape_cast %16 : vector<8xf32> to vector<8x1xf32>
    %18 = vector.broadcast %17 : vector<8x1xf32> to vector<8x8xf32>
    %19 = arith.subf %15, %18 : vector<8x8xf32>
    %20 = math.exp %19 : vector<8x8xf32>
    %cst_14 = arith.constant dense<0.000000e+00> : vector<8xf32>
    %21 = vector.multi_reduction <add>, %20, %cst_14 [1] : vector<8x8xf32> to vector<8xf32>
    %22 = vector.shape_cast %21 : vector<8xf32> to vector<8x1xf32>
    %23 = vector.broadcast %22 : vector<8x1xf32> to vector<8x8xf32>
    %24 = arith.divf %20, %23 : vector<8x8xf32>
    %cst_15 = arith.constant dense<0.000000e+00> : vector<8x8xf32>
    %25 = tpu.matmul %24, %14, %cst_15 {dimension_numbers = #tpu.dot_dimension_numbers<[1], [0], [0], [1], [0, 0, 1, 1], [], []>} : vector<8x8xf32>, vector<8x8xf32>, vector<8x8xf32> -> vector<8x8xf32>
    %c0_16 = arith.constant 0 : index
    %c0_17 = arith.constant 0 : index
    %26 = vector.load %arg16[%c0_16, %c0_17] : memref<8x32xf32, #tpu.memory_space<vmem>>, vector<8x8xf32>
    tpu.vector_store %arg16[%c0_16, %c0_17], %25 {strides = array<i32>} : memref<8x32xf32, #tpu.memory_space<vmem>>, vector<8x8xf32>,
    %27 = vector.extract_strided_slice %11 {offsets = [0, 8], sizes = [8, 8], strides = [1, 1]} : vector<8x32xf32> to vector<8x8xf32>
    %c0_18 = arith.constant 0 : index
    %c8 = arith.constant 8 : index
    %28 = vector.load %arg14[%c0_18, %c8] : memref<8x32xf32, #tpu.memory_space<vmem>>, vector<8x8xf32>
    %c0_19 = arith.constant 0 : index
    %c8_20 = arith.constant 8 : index
    %29 = vector.load %arg15[%c0_19, %c8_20] : memref<8x32xf32, #tpu.memory_space<vmem>>, vector<8x8xf32>
    %cst_21 = arith.constant dense<0.000000e+00> : vector<8x8xf32>
    %30 = tpu.matmul %27, %28, %cst_21 {dimension_numbers = #tpu.dot_dimension_numbers<[1], [1], [0], [0], [0, 0, 1, 0], [], []>} : vector<8x8xf32>, vector<8x8xf32>, vector<8x8xf32> -> vector<8x8xf32>
    %cst_22 = arith.constant dense<0xFF800000> : vector<8xf32>
    %31 = vector.multi_reduction <maximumf>, %30, %cst_22 [1] : vector<8x8xf32> to vector<8xf32>
    %32 = vector.shape_cast %31 : vector<8xf32> to vector<8x1xf32>
    %33 = vector.broadcast %32 : vector<8x1xf32> to vector<8x8xf32>
    %34 = arith.subf %30, %33 : vector<8x8xf32>
    %35 = math.exp %34 : vector<8x8xf32>
    %cst_23 = arith.constant dense<0.000000e+00> : vector<8xf32>
    %36 = vector.multi_reduction <add>, %35, %cst_23 [1] : vector<8x8xf32> to vector<8xf32>
    %37 = vector.shape_cast %36 : vector<8xf32> to vector<8x1xf32>
    %38 = vector.broadcast %37 : vector<8x1xf32> to vector<8x8xf32>
    %39 = arith.divf %35, %38 : vector<8x8xf32>
    %cst_24 = arith.constant dense<0.000000e+00> : vector<8x8xf32>
    %40 = tpu.matmul %39, %29, %cst_24 {dimension_numbers = #tpu.dot_dimension_numbers<[1], [0], [0], [1], [0, 0, 1, 1], [], []>} : vector<8x8xf32>, vector<8x8xf32>, vector<8x8xf32> -> vector<8x8xf32>
    %c0_25 = arith.constant 0 : index
    %c8_26 = arith.constant 8 : index
    %41 = vector.load %arg16[%c0_25, %c8_26] : memref<8x32xf32, #tpu.memory_space<vmem>>, vector<8x8xf32>
    tpu.vector_store %arg16[%c0_25, %c8_26], %40 {strides = array<i32>} : memref<8x32xf32, #tpu.memory_space<vmem>>, vector<8x8xf32>,
    %42 = vector.extract_strided_slice %11 {offsets = [0, 16], sizes = [8, 8], strides = [1, 1]} : vector<8x32xf32> to vector<8x8xf32>
    %c0_27 = arith.constant 0 : index
    %c16 = arith.constant 16 : index
    %43 = vector.load %arg14[%c0_27, %c16] : memref<8x32xf32, #tpu.memory_space<vmem>>, vector<8x8xf32>
    %c0_28 = arith.constant 0 : index
    %c16_29 = arith.constant 16 : index
    %44 = vector.load %arg15[%c0_28, %c16_29] : memref<8x32xf32, #tpu.memory_space<vmem>>, vector<8x8xf32>
    %cst_30 = arith.constant dense<0.000000e+00> : vector<8x8xf32>
    %45 = tpu.matmul %42, %43, %cst_30 {dimension_numbers = #tpu.dot_dimension_numbers<[1], [1], [0], [0], [0, 0, 1, 0], [], []>} : vector<8x8xf32>, vector<8x8xf32>, vector<8x8xf32> -> vector<8x8xf32>
    %cst_31 = arith.constant dense<0xFF800000> : vector<8xf32>
    %46 = vector.multi_reduction <maximumf>, %45, %cst_31 [1] : vector<8x8xf32> to vector<8xf32>
    %47 = vector.shape_cast %46 : vector<8xf32> to vector<8x1xf32>
    %48 = vector.broadcast %47 : vector<8x1xf32> to vector<8x8xf32>
    %49 = arith.subf %45, %48 : vector<8x8xf32>
    %50 = math.exp %49 : vector<8x8xf32>
    %cst_32 = arith.constant dense<0.000000e+00> : vector<8xf32>
    %51 = vector.multi_reduction <add>, %50, %cst_32 [1] : vector<8x8xf32> to vector<8xf32>
    %52 = vector.shape_cast %51 : vector<8xf32> to vector<8x1xf32>
    %53 = vector.broadcast %52 : vector<8x1xf32> to vector<8x8xf32>
    %54 = arith.divf %50, %53 : vector<8x8xf32>
    %cst_33 = arith.constant dense<0.000000e+00> : vector<8x8xf32>
    %55 = tpu.matmul %54, %44, %cst_33 {dimension_numbers = #tpu.dot_dimension_numbers<[1], [0], [0], [1], [0, 0, 1, 1], [], []>} : vector<8x8xf32>, vector<8x8xf32>, vector<8x8xf32> -> vector<8x8xf32>
    %c0_34 = arith.constant 0 : index
    %c16_35 = arith.constant 16 : index
    %56 = vector.load %arg16[%c0_34, %c16_35] : memref<8x32xf32, #tpu.memory_space<vmem>>, vector<8x8xf32>
    tpu.vector_store %arg16[%c0_34, %c16_35], %55 {strides = array<i32>} : memref<8x32xf32, #tpu.memory_space<vmem>>, vector<8x8xf32>,
    %57 = vector.extract_strided_slice %11 {offsets = [0, 24], sizes = [8, 8], strides = [1, 1]} : vector<8x32xf32> to vector<8x8xf32>
    %c0_36 = arith.constant 0 : index
    %c24 = arith.constant 24 : index
    %58 = vector.load %arg14[%c0_36, %c24] : memref<8x32xf32, #tpu.memory_space<vmem>>, vector<8x8xf32>
    %c0_37 = arith.constant 0 : index
    %c24_38 = arith.constant 24 : index
    %59 = vector.load %arg15[%c0_37, %c24_38] : memref<8x32xf32, #tpu.memory_space<vmem>>, vector<8x8xf32>
    %cst_39 = arith.constant dense<0.000000e+00> : vector<8x8xf32>
    %60 = tpu.matmul %57, %58, %cst_39 {dimension_numbers = #tpu.dot_dimension_numbers<[1], [1], [0], [0], [0, 0, 1, 0], [], []>} : vector<8x8xf32>, vector<8x8xf32>, vector<8x8xf32> -> vector<8x8xf32>
    %cst_40 = arith.constant dense<0xFF800000> : vector<8xf32>
    %61 = vector.multi_reduction <maximumf>, %60, %cst_40 [1] : vector<8x8xf32> to vector<8xf32>
    %62 = vector.shape_cast %61 : vector<8xf32> to vector<8x1xf32>
    %63 = vector.broadcast %62 : vector<8x1xf32> to vector<8x8xf32>
    %64 = arith.subf %60, %63 : vector<8x8xf32>
    %65 = math.exp %64 : vector<8x8xf32>
    %cst_41 = arith.constant dense<0.000000e+00> : vector<8xf32>
    %66 = vector.multi_reduction <add>, %65, %cst_41 [1] : vector<8x8xf32> to vector<8xf32>
    %67 = vector.shape_cast %66 : vector<8xf32> to vector<8x1xf32>
    %68 = vector.broadcast %67 : vector<8x1xf32> to vector<8x8xf32>
    %69 = arith.divf %65, %68 : vector<8x8xf32>
    %cst_42 = arith.constant dense<0.000000e+00> : vector<8x8xf32>
    %70 = tpu.matmul %69, %59, %cst_42 {dimension_numbers = #tpu.dot_dimension_numbers<[1], [0], [0], [1], [0, 0, 1, 1], [], []>} : vector<8x8xf32>, vector<8x8xf32>, vector<8x8xf32> -> vector<8x8xf32>
    %c0_43 = arith.constant 0 : index
    %c24_44 = arith.constant 24 : index
    %71 = vector.load %arg16[%c0_43, %c24_44] : memref<8x32xf32, #tpu.memory_space<vmem>>, vector<8x8xf32>
    tpu.vector_store %arg16[%c0_43, %c24_44], %70 {strides = array<i32>} : memref<8x32xf32, #tpu.memory_space<vmem>>, vector<8x8xf32>,
    %c0_45 = arith.constant 0 : index
    %c0_46 = arith.constant 0 : index
    %72 = vector.load %arg16[%c0_45, %c0_46] : memref<8x32xf32, #tpu.memory_space<vmem>>, vector<8x32xf32>
    %c0_47 = arith.constant 0 : index
    %c0_48 = arith.constant 0 : index
    %73 = vector.load %arg11[%c0_47, %c0_48] : memref<32x32xf32, #tpu.memory_space<vmem>>, vector<32x32xf32>
    %cst_49 = arith.constant dense<0.000000e+00> : vector<8x32xf32>
    %74 = tpu.matmul %72, %73, %cst_49 {dimension_numbers = #tpu.dot_dimension_numbers<[1], [0], [0], [1], [0, 0, 1, 1], [], []>} : vector<8x32xf32>, vector<32x32xf32>, vector<8x32xf32> -> vector<8x32xf32>
    %c0_50 = arith.constant 0 : index
    %c0_51 = arith.constant 0 : index
    %75 = vector.load %arg12[%c0_50, %c0_51] : memref<1x32xf32, #tpu.memory_space<vmem>>, vector<1x32xf32>
    %76 = vector.broadcast %75 : vector<1x32xf32> to vector<8x32xf32>
    %77 = arith.addf %74, %76 : vector<8x32xf32>
    %c0_52 = arith.constant 0 : index
    %c0_53 = arith.constant 0 : index
    %c0_54 = arith.constant 0 : index
    %78 = vector.load %arg13[%c0_52, %c0_53, %c0_54] : memref<1x8x32xf32, #tpu.memory_space<vmem>>, vector<1x8x32xf32>
    %79 = vector.shape_cast %78 : vector<1x8x32xf32> to vector<8x32xf32>
    %80 = vector.shape_cast %77 : vector<8x32xf32> to vector<1x8x32xf32>
    tpu.vector_store %arg13[%c0_52, %c0_53, %c0_54], %80 {strides = array<i32>} : memref<1x8x32xf32, #tpu.memory_space<vmem>>, vector<1x8x32xf32>,
    return
  }
  func.func @transform_0(%arg0: i32, %arg1: i32) -> (i32, i32, i32) {
    %c0_i32 = arith.constant 0 : i32
    %c0_i32_0 = arith.constant 0 : i32
    return %arg0, %arg1, %c0_i32 : i32, i32, i32
  }
  func.func @transform_1(%arg0: i32, %arg1: i32) -> (i32, i32, i32) {
    %c0_i32 = arith.constant 0 : i32
    %c0_i32_0 = arith.constant 0 : i32
    %c0_i32_1 = arith.constant 0 : i32
    return %arg0, %c0_i32, %c0_i32_0 : i32, i32, i32
  }
  func.func @transform_2(%arg0: i32, %arg1: i32) -> (i32, i32, i32) {
    %c0_i32 = arith.constant 0 : i32
    %c0_i32_0 = arith.constant 0 : i32
    %c0_i32_1 = arith.constant 0 : i32
    return %arg0, %c0_i32, %c0_i32_0 : i32, i32, i32
  }
  func.func @transform_3(%arg0: i32, %arg1: i32) -> (i32, i32) {
    %c0_i32 = arith.constant 0 : i32
    %c0_i32_0 = arith.constant 0 : i32
    %c0_i32_1 = arith.constant 0 : i32
    return %c0_i32, %c0_i32_0 : i32, i32
  }
  func.func @transform_4(%arg0: i32, %arg1: i32) -> (i32, i32) {
    %c0_i32 = arith.constant 0 : i32
    %c0_i32_0 = arith.constant 0 : i32
    %c0_i32_1 = arith.constant 0 : i32
    return %c0_i32, %c0_i32_0 : i32, i32
  }
  func.func @transform_5(%arg0: i32, %arg1: i32) -> (i32, i32) {
    %c0_i32 = arith.constant 0 : i32
    %c0_i32_0 = arith.constant 0 : i32
    %c0_i32_1 = arith.constant 0 : i32
    return %c0_i32, %c0_i32_0 : i32, i32
  }
  func.func @transform_6(%arg0: i32, %arg1: i32) -> (i32, i32) {
    %c0_i32 = arith.constant 0 : i32
    %c0_i32_0 = arith.constant 0 : i32
    %c0_i32_1 = arith.constant 0 : i32
    return %c0_i32, %c0_i32_0 : i32, i32
  }
  func.func @transform_7(%arg0: i32, %arg1: i32) -> (i32, i32) {
    %c0_i32 = arith.constant 0 : i32
    %c0_i32_0 = arith.constant 0 : i32
    %c0_i32_1 = arith.constant 0 : i32
    return %c0_i32, %c0_i32_0 : i32, i32
  }
  func.func @transform_8(%arg0: i32, %arg1: i32) -> (i32, i32) {
    %c0_i32 = arith.constant 0 : i32
    %c0_i32_0 = arith.constant 0 : i32
    %c0_i32_1 = arith.constant 0 : i32
    return %c0_i32, %c0_i32_0 : i32, i32
  }
  func.func @transform_9(%arg0: i32, %arg1: i32) -> (i32, i32) {
    %c0_i32 = arith.constant 0 : i32
    %c0_i32_0 = arith.constant 0 : i32
    %c0_i32_1 = arith.constant 0 : i32
    return %c0_i32, %c0_i32_0 : i32, i32
  }
  func.func @transform_10(%arg0: i32, %arg1: i32) -> (i32, i32) {
    %c0_i32 = arith.constant 0 : i32
    %c0_i32_0 = arith.constant 0 : i32
    %c0_i32_1 = arith.constant 0 : i32
    return %c0_i32, %c0_i32_0 : i32, i32
  }
  func.func @transform_11(%arg0: i32, %arg1: i32) -> (i32, i32, i32) {
    %c0_i32 = arith.constant 0 : i32
    %c0_i32_0 = arith.constant 0 : i32
    return %arg0, %arg1, %c0_i32 : i32, i32, i32
  }
}

module attributes {stable_mosaic.version = 11 : i64} {
  func.func @mha_kernel(%arg0: i32, %arg1: i32, %arg2: memref<1x8x32xf32, #tpu.memory_space<vmem>>, %arg3: memref<1x8x32xf32, #tpu.memory_space<vmem>>, %arg4: memref<1x8x32xf32, #tpu.memory_space<vmem>>, %arg5: memref<32x32xf32, #tpu.memory_space<vmem>>, %arg6: memref<1x32xf32, #tpu.memory_space<vmem>>, %arg7: memref<32x32xf32, #tpu.memory_space<vmem>>, %arg8: memref<1x32xf32, #tpu.memory_space<vmem>>, %arg9: memref<32x32xf32, #tpu.memory_space<vmem>>, %arg10: memref<1x32xf32, #tpu.memory_space<vmem>>, %arg11: memref<32x32xf32, #tpu.memory_space<vmem>>, %arg12: memref<1x32xf32, #tpu.memory_space<vmem>>, %arg13: memref<1x8x32xf32, #tpu.memory_space<vmem>>, %arg14: memref<8x32xf32, #tpu.memory_space<vmem>>, %arg15: memref<8x32xf32, #tpu.memory_space<vmem>>, %arg16: memref<8x32xf32, #tpu.memory_space<vmem>>) attributes {dimension_semantics = [#tpu.dimension_semantics<parallel>, #tpu.dimension_semantics<arbitrary>], iteration_bounds = array<i64: 2, 1>, scalar_prefetch = 0 : i64, scratch_operands = 3 : i64, tpu.core_type = #tpu.core_type<tc>, window_params = [{transform_indices = @transform_0, window_bounds = array<i64: 1, 8, 32>}, {transform_indices = @transform_1, window_bounds = array<i64: 1, 8, 32>}, {transform_indices = @transform_2, window_bounds = array<i64: 1, 8, 32>}, {pipeline_mode = #tpu.pipeline_mode<synchronous>, transform_indices = @transform_3, window_bounds = array<i64: 32, 32>}, {pipeline_mode = #tpu.pipeline_mode<synchronous>, transform_indices = @transform_4, window_bounds = array<i64: 1, 32>}, {pipeline_mode = #tpu.pipeline_mode<synchronous>, transform_indices = @transform_5, window_bounds = array<i64: 32, 32>}, {pipeline_mode = #tpu.pipeline_mode<synchronous>, transform_indices = @transform_6, window_bounds = array<i64: 1, 32>}, {pipeline_mode = #tpu.pipeline_mode<synchronous>, transform_indices = @transform_7, window_bounds = array<i64: 32, 32>}, {pipeline_mode = #tpu.pipeline_mode<synchronous>, transform_indices = @transform_8, window_bounds = array<i64: 1, 32>}, {pipeline_mode = #tpu.pipeline_mode<synchronous>, transform_indices = @transform_9, window_bounds = array<i64: 32, 32>}, {pipeline_mode = #tpu.pipeline_mode<synchronous>, transform_indices = @transform_10, window_bounds = array<i64: 1, 32>}, {transform_indices = @transform_11, window_bounds = array<i64: 1, 8, 32>}]} {
    %c0_i32 = arith.constant 0 : i32
    %0 = arith.cmpi eq, %arg1, %c0_i32 : i32
    %1 = arith.extui %0 : i1 to i32
    %c0_i32_0 = arith.constant 0 : i32
    %2 = arith.cmpi ne, %1, %c0_i32_0 : i32
    scf.if %2 {
      %c0_55 = arith.constant 0 : index
      %c0_56 = arith.constant 0 : index
      %c0_57 = arith.constant 0 : index
      %81 = vector.load %arg3[%c0_55, %c0_56, %c0_57] : memref<1x8x32xf32, #tpu.memory_space<vmem>>, vector<1x8x32xf32>
      %82 = vector.shape_cast %81 : vector<1x8x32xf32> to vector<8x32xf32>
      %c0_58 = arith.constant 0 : index
      %c0_59 = arith.constant 0 : index
      %83 = vector.load %arg7[%c0_58, %c0_59] : memref<32x32xf32, #tpu.memory_space<vmem>>, vector<32x32xf32>
      %cst_60 = arith.constant dense<0.000000e+00> : vector<8x32xf32>
      %84 = tpu.matmul %82, %83, %cst_60 {dimension_numbers = #tpu.dot_dimension_numbers<[1], [0], [0], [1], [0, 0, 1, 1], [], []>} : vector<8x32xf32>, vector<32x32xf32>, vector<8x32xf32> -> vector<8x32xf32>
      %c0_61 = arith.constant 0 : index
      %c0_62 = arith.constant 0 : index
      %85 = vector.load %arg8[%c0_61, %c0_62] : memref<1x32xf32, #tpu.memory_space<vmem>>, vector<1x32xf32>
      %86 = vector.broadcast %85 : vector<1x32xf32> to vector<8x32xf32>
      %87 = arith.addf %84, %86 : vector<8x32xf32>
      %c0_63 = arith.constant 0 : index
      %c0_64 = arith.constant 0 : index
      %88 = vector.load %arg14[%c0_63, %c0_64] : memref<8x32xf32, #tpu.memory_space<vmem>>, vector<8x32xf32>
      tpu.vector_store %arg14[%c0_63, %c0_64], %87 {strides = array<i32>} : memref<8x32xf32, #tpu.memory_space<vmem>>, vector<8x32xf32>,
      %c0_65 = arith.constant 0 : index
      %c0_66 = arith.constant 0 : index
      %c0_67 = arith.constant 0 : index
      %89 = vector.load %arg4[%c0_65, %c0_66, %c0_67] : memref<1x8x32xf32, #tpu.memory_space<vmem>>, vector<1x8x32xf32>
      %90 = vector.shape_cast %89 : vector<1x8x32xf32> to vector<8x32xf32>
      %c0_68 = arith.constant 0 : index
      %c0_69 = arith.constant 0 : index
      %91 = vector.load %arg9[%c0_68, %c0_69] : memref<32x32xf32, #tpu.memory_space<vmem>>, vector<32x32xf32>
      %cst_70 = arith.constant dense<0.000000e+00> : vector<8x32xf32>
      %92 = tpu.matmul %90, %91, %cst_70 {dimension_numbers = #tpu.dot_dimension_numbers<[1], [0], [0], [1], [0, 0, 1, 1], [], []>} : vector<8x32xf32>, vector<32x32xf32>, vector<8x32xf32> -> vector<8x32xf32>
      %c0_71 = arith.constant 0 : index
      %c0_72 = arith.constant 0 : index
      %93 = vector.load %arg10[%c0_71, %c0_72] : memref<1x32xf32, #tpu.memory_space<vmem>>, vector<1x32xf32>
      %94 = vector.broadcast %93 : vector<1x32xf32> to vector<8x32xf32>
      %95 = arith.addf %92, %94 : vector<8x32xf32>
      %c0_73 = arith.constant 0 : index
      %c0_74 = arith.constant 0 : index
      %96 = vector.load %arg15[%c0_73, %c0_74] : memref<8x32xf32, #tpu.memory_space<vmem>>, vector<8x32xf32>
      tpu.vector_store %arg15[%c0_73, %c0_74], %95 {strides = array<i32>} : memref<8x32xf32, #tpu.memory_space<vmem>>, vector<8x32xf32>,
    } else {
    }
    %c0 = arith.constant 0 : index
    %c0_1 = arith.constant 0 : index
    %c0_2 = arith.constant 0 : index
    %3 = vector.load %arg2[%c0, %c0_1, %c0_2] : memref<1x8x32xf32, #tpu.memory_space<vmem>>, vector<1x8x32xf32>
    %4 = vector.shape_cast %3 : vector<1x8x32xf32> to vector<8x32xf32>
    %c0_3 = arith.constant 0 : index
    %c0_4 = arith.constant 0 : index
    %5 = vector.load %arg5[%c0_3, %c0_4] : memref<32x32xf32, #tpu.memory_space<vmem>>, vector<32x32xf32>
    %cst = arith.constant dense<0.000000e+00> : vector<8x32xf32>
    %6 = tpu.matmul %4, %5, %cst {dimension_numbers = #tpu.dot_dimension_numbers<[1], [0], [0], [1], [0, 0, 1, 1], [], []>} : vector<8x32xf32>, vector<32x32xf32>, vector<8x32xf32> -> vector<8x32xf32>
    %c0_5 = arith.constant 0 : index
    %c0_6 = arith.constant 0 : index
    %7 = vector.load %arg6[%c0_5, %c0_6] : memref<1x32xf32, #tpu.memory_space<vmem>>, vector<1x32xf32>
    %8 = vector.broadcast %7 : vector<1x32xf32> to vector<8x32xf32>
    %9 = arith.addf %6, %8 : vector<8x32xf32>
    %cst_7 = arith.constant 0.353553385 : f32
    %10 = vector.broadcast %cst_7 : f32 to vector<8x32xf32>
    %11 = arith.mulf %9, %10 : vector<8x32xf32>
    %12 = vector.extract_strided_slice %11 {offsets = [0, 0], sizes = [8, 8], strides = [1, 1]} : vector<8x32xf32> to vector<8x8xf32>
    %c0_8 = arith.constant 0 : index
    %c0_9 = arith.constant 0 : index
    %13 = vector.load %arg14[%c0_8, %c0_9] : memref<8x32xf32, #tpu.memory_space<vmem>>, vector<8x8xf32>
    %c0_10 = arith.constant 0 : index
    %c0_11 = arith.constant 0 : index
    %14 = vector.load %arg15[%c0_10, %c0_11] : memref<8x32xf32, #tpu.memory_space<vmem>>, vector<8x8xf32>
    %cst_12 = arith.constant dense<0.000000e+00> : vector<8x8xf32>
    %15 = tpu.matmul %12, %13, %cst_12 {dimension_numbers = #tpu.dot_dimension_numbers<[1], [1], [0], [0], [0, 0, 1, 0], [], []>} : vector<8x8xf32>, vector<8x8xf32>, vector<8x8xf32> -> vector<8x8xf32>
    %cst_13 = arith.constant dense<0xFF800000> : vector<8xf32>
    %16 = vector.multi_reduction <maximumf>, %15, %cst_13 [1] : vector<8x8xf32> to vector<8xf32>
    %17 = vector.shape_cast %16 : vector<8xf32> to vector<8x1xf32>
    %18 = vector.broadcast %17 : vector<8x1xf32> to vector<8x8xf32>
    %19 = arith.subf %15, %18 : vector<8x8xf32>
    %20 = math.exp %19 : vector<8x8xf32>
    %cst_14 = arith.constant dense<0.000000e+00> : vector<8xf32>
    %21 = vector.multi_reduction <add>, %20, %cst_14 [1] : vector<8x8xf32> to vector<8xf32>
    %22 = vector.shape_cast %21 : vector<8xf32> to vector<8x1xf32>
    %23 = vector.broadcast %22 : vector<8x1xf32> to vector<8x8xf32>
    %24 = arith.divf %20, %23 : vector<8x8xf32>
    %cst_15 = arith.constant dense<0.000000e+00> : vector<8x8xf32>
    %25 = tpu.matmul %24, %14, %cst_15 {dimension_numbers = #tpu.dot_dimension_numbers<[1], [0], [0], [1], [0, 0, 1, 1], [], []>} : vector<8x8xf32>, vector<8x8xf32>, vector<8x8xf32> -> vector<8x8xf32>
    %c0_16 = arith.constant 0 : index
    %c0_17 = arith.constant 0 : index
    %26 = vector.load %arg16[%c0_16, %c0_17] : memref<8x32xf32, #tpu.memory_space<vmem>>, vector<8x8xf32>
    tpu.vector_store %arg16[%c0_16, %c0_17], %25 {strides = array<i32>} : memref<8x32xf32, #tpu.memory_space<vmem>>, vector<8x8xf32>,
    %27 = vector.extract_strided_slice %11 {offsets = [0, 8], sizes = [8, 8], strides = [1, 1]} : vector<8x32xf32> to vector<8x8xf32>
    %c0_18 = arith.constant 0 : index
    %c8 = arith.constant 8 : index
    %28 = vector.load %arg14[%c0_18, %c8] : memref<8x32xf32, #tpu.memory_space<vmem>>, vector<8x8xf32>
    %c0_19 = arith.constant 0 : index
    %c8_20 = arith.constant 8 : index
    %29 = vector.load %arg15[%c0_19, %c8_20] : memref<8x32xf32, #tpu.memory_space<vmem>>, vector<8x8xf32>
    %cst_21 = arith.constant dense<0.000000e+00> : vector<8x8xf32>
    %30 = tpu.matmul %27, %28, %cst_21 {dimension_numbers = #tpu.dot_dimension_numbers<[1], [1], [0], [0], [0, 0, 1, 0], [], []>} : vector<8x8xf32>, vector<8x8xf32>, vector<8x8xf32> -> vector<8x8xf32>
    %cst_22 = arith.constant dense<0xFF800000> : vector<8xf32>
    %31 = vector.multi_reduction <maximumf>, %30, %cst_22 [1] : vector<8x8xf32> to vector<8xf32>
    %32 = vector.shape_cast %31 : vector<8xf32> to vector<8x1xf32>
    %33 = vector.broadcast %32 : vector<8x1xf32> to vector<8x8xf32>
    %34 = arith.subf %30, %33 : vector<8x8xf32>
    %35 = math.exp %34 : vector<8x8xf32>
    %cst_23 = arith.constant dense<0.000000e+00> : vector<8xf32>
    %36 = vector.multi_reduction <add>, %35, %cst_23 [1] : vector<8x8xf32> to vector<8xf32>
    %37 = vector.shape_cast %36 : vector<8xf32> to vector<8x1xf32>
    %38 = vector.broadcast %37 : vector<8x1xf32> to vector<8x8xf32>
    %39 = arith.divf %35, %38 : vector<8x8xf32>
    %cst_24 = arith.constant dense<0.000000e+00> : vector<8x8xf32>
    %40 = tpu.matmul %39, %29, %cst_24 {dimension_numbers = #tpu.dot_dimension_numbers<[1], [0], [0], [1], [0, 0, 1, 1], [], []>} : vector<8x8xf32>, vector<8x8xf32>, vector<8x8xf32> -> vector<8x8xf32>
    %c0_25 = arith.constant 0 : index
    %c8_26 = arith.constant 8 : index
    %41 = vector.load %arg16[%c0_25, %c8_26] : memref<8x32xf32, #tpu.memory_space<vmem>>, vector<8x8xf32>
    tpu.vector_store %arg16[%c0_25, %c8_26], %40 {strides = array<i32>} : memref<8x32xf32, #tpu.memory_space<vmem>>, vector<8x8xf32>,
    %42 = vector.extract_strided_slice %11 {offsets = [0, 16], sizes = [8, 8], strides = [1, 1]} : vector<8x32xf32> to vector<8x8xf32>
    %c0_27 = arith.constant 0 : index
    %c16 = arith.constant 16 : index
    %43 = vector.load %arg14[%c0_27, %c16] : memref<8x32xf32, #tpu.memory_space<vmem>>, vector<8x8xf32>
    %c0_28 = arith.constant 0 : index
    %c16_29 = arith.constant 16 : index
    %44 = vector.load %arg15[%c0_28, %c16_29] : memref<8x32xf32, #tpu.memory_space<vmem>>, vector<8x8xf32>
    %cst_30 = arith.constant dense<0.000000e+00> : vector<8x8xf32>
    %45 = tpu.matmul %42, %43, %cst_30 {dimension_numbers = #tpu.dot_dimension_numbers<[1], [1], [0], [0], [0, 0, 1, 0], [], []>} : vector<8x8xf32>, vector<8x8xf32>, vector<8x8xf32> -> vector<8x8xf32>
    %cst_31 = arith.constant dense<0xFF800000> : vector<8xf32>
    %46 = vector.multi_reduction <maximumf>, %45, %cst_31 [1] : vector<8x8xf32> to vector<8xf32>
    %47 = vector.shape_cast %46 : vector<8xf32> to vector<8x1xf32>
    %48 = vector.broadcast %47 : vector<8x1xf32> to vector<8x8xf32>
    %49 = arith.subf %45, %48 : vector<8x8xf32>
    %50 = math.exp %49 : vector<8x8xf32>
    %cst_32 = arith.constant dense<0.000000e+00> : vector<8xf32>
    %51 = vector.multi_reduction <add>, %50, %cst_32 [1] : vector<8x8xf32> to vector<8xf32>
    %52 = vector.shape_cast %51 : vector<8xf32> to vector<8x1xf32>
    %53 = vector.broadcast %52 : vector<8x1xf32> to vector<8x8xf32>
    %54 = arith.divf %50, %53 : vector<8x8xf32>
    %cst_33 = arith.constant dense<0.000000e+00> : vector<8x8xf32>
    %55 = tpu.matmul %54, %44, %cst_33 {dimension_numbers = #tpu.dot_dimension_numbers<[1], [0], [0], [1], [0, 0, 1, 1], [], []>} : vector<8x8xf32>, vector<8x8xf32>, vector<8x8xf32> -> vector<8x8xf32>
    %c0_34 = arith.constant 0 : index
    %c16_35 = arith.constant 16 : index
    %56 = vector.load %arg16[%c0_34, %c16_35] : memref<8x32xf32, #tpu.memory_space<vmem>>, vector<8x8xf32>
    tpu.vector_store %arg16[%c0_34, %c16_35], %55 {strides = array<i32>} : memref<8x32xf32, #tpu.memory_space<vmem>>, vector<8x8xf32>,
    %57 = vector.extract_strided_slice %11 {offsets = [0, 24], sizes = [8, 8], strides = [1, 1]} : vector<8x32xf32> to vector<8x8xf32>
    %c0_36 = arith.constant 0 : index
    %c24 = arith.constant 24 : index
    %58 = vector.load %arg14[%c0_36, %c24] : memref<8x32xf32, #tpu.memory_space<vmem>>, vector<8x8xf32>
    %c0_37 = arith.constant 0 : index
    %c24_38 = arith.constant 24 : index
    %59 = vector.load %arg15[%c0_37, %c24_38] : memref<8x32xf32, #tpu.memory_space<vmem>>, vector<8x8xf32>
    %cst_39 = arith.constant dense<0.000000e+00> : vector<8x8xf32>
    %60 = tpu.matmul %57, %58, %cst_39 {dimension_numbers = #tpu.dot_dimension_numbers<[1], [1], [0], [0], [0, 0, 1, 0], [], []>} : vector<8x8xf32>, vector<8x8xf32>, vector<8x8xf32> -> vector<8x8xf32>
    %cst_40 = arith.constant dense<0xFF800000> : vector<8xf32>
    %61 = vector.multi_reduction <maximumf>, %60, %cst_40 [1] : vector<8x8xf32> to vector<8xf32>
    %62 = vector.shape_cast %61 : vector<8xf32> to vector<8x1xf32>
    %63 = vector.broadcast %62 : vector<8x1xf32> to vector<8x8xf32>
    %64 = arith.subf %60, %63 : vector<8x8xf32>
    %65 = math.exp %64 : vector<8x8xf32>
    %cst_41 = arith.constant dense<0.000000e+00> : vector<8xf32>
    %66 = vector.multi_reduction <add>, %65, %cst_41 [1] : vector<8x8xf32> to vector<8xf32>
    %67 = vector.shape_cast %66 : vector<8xf32> to vector<8x1xf32>
    %68 = vector.broadcast %67 : vector<8x1xf32> to vector<8x8xf32>
    %69 = arith.divf %65, %68 : vector<8x8xf32>
    %cst_42 = arith.constant dense<0.000000e+00> : vector<8x8xf32>
    %70 = tpu.matmul %69, %59, %cst_42 {dimension_numbers = #tpu.dot_dimension_numbers<[1], [0], [0], [1], [0, 0, 1, 1], [], []>} : vector<8x8xf32>, vector<8x8xf32>, vector<8x8xf32> -> vector<8x8xf32>
    %c0_43 = arith.constant 0 : index
    %c24_44 = arith.constant 24 : index
    %71 = vector.load %arg16[%c0_43, %c24_44] : memref<8x32xf32, #tpu.memory_space<vmem>>, vector<8x8xf32>
    tpu.vector_store %arg16[%c0_43, %c24_44], %70 {strides = array<i32>} : memref<8x32xf32, #tpu.memory_space<vmem>>, vector<8x8xf32>,
    %c0_45 = arith.constant 0 : index
    %c0_46 = arith.constant 0 : index
    %72 = vector.load %arg16[%c0_45, %c0_46] : memref<8x32xf32, #tpu.memory_space<vmem>>, vector<8x32xf32>
    %c0_47 = arith.constant 0 : index
    %c0_48 = arith.constant 0 : index
    %73 = vector.load %arg11[%c0_47, %c0_48] : memref<32x32xf32, #tpu.memory_space<vmem>>, vector<32x32xf32>
    %cst_49 = arith.constant dense<0.000000e+00> : vector<8x32xf32>
    %74 = tpu.matmul %72, %73, %cst_49 {dimension_numbers = #tpu.dot_dimension_numbers<[1], [0], [0], [1], [0, 0, 1, 1], [], []>} : vector<8x32xf32>, vector<32x32xf32>, vector<8x32xf32> -> vector<8x32xf32>
    %c0_50 = arith.constant 0 : index
    %c0_51 = arith.constant 0 : index
    %75 = vector.load %arg12[%c0_50, %c0_51] : memref<1x32xf32, #tpu.memory_space<vmem>>, vector<1x32xf32>
    %76 = vector.broadcast %75 : vector<1x32xf32> to vector<8x32xf32>
    %77 = arith.addf %74, %76 : vector<8x32xf32>
    %c0_52 = arith.constant 0 : index
    %c0_53 = arith.constant 0 : index
    %c0_54 = arith.constant 0 : index
    %78 = vector.load %arg13[%c0_52, %c0_53, %c0_54] : memref<1x8x32xf32, #tpu.memory_space<vmem>>, vector<1x8x32xf32>
    %79 = vector.shape_cast %78 : vector<1x8x32xf32> to vector<8x32xf32>
    %80 = vector.shape_cast %77 : vector<8x32xf32> to vector<1x8x32xf32>
    tpu.vector_store %arg13[%c0_52, %c0_53, %c0_54], %80 {strides = array<i32>} : memref<1x8x32xf32, #tpu.memory_space<vmem>>, vector<1x8x32xf32>,
    return
  }
  func.func @transform_0(%arg0: i32, %arg1: i32) -> (i32, i32, i32) {
    %c0_i32 = arith.constant 0 : i32
    %c0_i32_0 = arith.constant 0 : i32
    return %arg0, %arg1, %c0_i32 : i32, i32, i32
  }
  func.func @transform_1(%arg0: i32, %arg1: i32) -> (i32, i32, i32) {
    %c0_i32 = arith.constant 0 : i32
    %c0_i32_0 = arith.constant 0 : i32
    %c0_i32_1 = arith.constant 0 : i32
    return %arg0, %c0_i32, %c0_i32_0 : i32, i32, i32
  }
  func.func @transform_2(%arg0: i32, %arg1: i32) -> (i32, i32, i32) {
    %c0_i32 = arith.constant 0 : i32
    %c0_i32_0 = arith.constant 0 : i32
    %c0_i32_1 = arith.constant 0 : i32
    return %arg0, %c0_i32, %c0_i32_0 : i32, i32, i32
  }
  func.func @transform_3(%arg0: i32, %arg1: i32) -> (i32, i32) {
    %c0_i32 = arith.constant 0 : i32
    %c0_i32_0 = arith.constant 0 : i32
    %c0_i32_1 = arith.constant 0 : i32
    return %c0_i32, %c0_i32_0 : i32, i32
  }
  func.func @transform_4(%arg0: i32, %arg1: i32) -> (i32, i32) {
    %c0_i32 = arith.constant 0 : i32
    %c0_i32_0 = arith.constant 0 : i32
    %c0_i32_1 = arith.constant 0 : i32
    return %c0_i32, %c0_i32_0 : i32, i32
  }
  func.func @transform_5(%arg0: i32, %arg1: i32) -> (i32, i32) {
    %c0_i32 = arith.constant 0 : i32
    %c0_i32_0 = arith.constant 0 : i32
    %c0_i32_1 = arith.constant 0 : i32
    return %c0_i32, %c0_i32_0 : i32, i32
  }
  func.func @transform_6(%arg0: i32, %arg1: i32) -> (i32, i32) {
    %c0_i32 = arith.constant 0 : i32
    %c0_i32_0 = arith.constant 0 : i32
    %c0_i32_1 = arith.constant 0 : i32
    return %c0_i32, %c0_i32_0 : i32, i32
  }
  func.func @transform_7(%arg0: i32, %arg1: i32) -> (i32, i32) {
    %c0_i32 = arith.constant 0 : i32
    %c0_i32_0 = arith.constant 0 : i32
    %c0_i32_1 = arith.constant 0 : i32
    return %c0_i32, %c0_i32_0 : i32, i32
  }
  func.func @transform_8(%arg0: i32, %arg1: i32) -> (i32, i32) {
    %c0_i32 = arith.constant 0 : i32
    %c0_i32_0 = arith.constant 0 : i32
    %c0_i32_1 = arith.constant 0 : i32
    return %c0_i32, %c0_i32_0 : i32, i32
  }
  func.func @transform_9(%arg0: i32, %arg1: i32) -> (i32, i32) {
    %c0_i32 = arith.constant 0 : i32
    %c0_i32_0 = arith.constant 0 : i32
    %c0_i32_1 = arith.constant 0 : i32
    return %c0_i32, %c0_i32_0 : i32, i32
  }
  func.func @transform_10(%arg0: i32, %arg1: i32) -> (i32, i32) {
    %c0_i32 = arith.constant 0 : i32
    %c0_i32_0 = arith.constant 0 : i32
    %c0_i32_1 = arith.constant 0 : i32
    return %c0_i32, %c0_i32_0 : i32, i32
  }
  func.func @transform_11(%arg0: i32, %arg1: i32) -> (i32, i32, i32) {
    %c0_i32 = arith.constant 0 : i32
    %c0_i32_0 = arith.constant 0 : i32
    return %arg0, %arg1, %c0_i32 : i32, i32, i32
  }
}

</mosaic_0001>

<bundles_post_ra>
// kernel: tpu_custom_call.1
= control target key start
LH: loop header
LB: loop body
LE: loop exit
PB: predicated region body
PF: predicated region fallthrough
CT: control target
= control target key end

     0   :  { %s3285_s0 = inlined_call_operand.hbm [shape: f32[2,8,32], index: 0, kind: input, shape index: {}]   ;;  %s3286_s1 = inlined_call_operand.hbm [shape: f32[2,8,32], index: 1, kind: input, shape index: {}]   ;;  %s3287_s2 = inlined_call_operand.hbm [shape: f32[2,8,32], index: 2, kind: input, shape index: {}]   ;;  %s3288_s3 = inlined_call_operand.hbm [shape: f32[32,32], index: 3, kind: input, shape index: {}]   ;;  %s3289_s4 = inlined_call_operand.hbm [shape: f32[1,32], index: 4, kind: input, shape index: {}]   ;;  %s3290_s5 = inlined_call_operand.hbm [shape: f32[32,32], index: 5, kind: input, shape index: {}]   ;;  %s3291_s6 = inlined_call_operand.hbm [shape: f32[1,32], index: 6, kind: input, shape index: {}]   ;;  %s3292_s7 = inlined_call_operand.hbm [shape: f32[32,32], index: 7, kind: input, shape index: {}]   ;;  %s3293_s8 = inlined_call_operand.hbm [shape: f32[1,32], index: 8, kind: input, shape index: {}]   ;;  %s3294_s9 = inlined_call_operand.hbm [shape: f32[32,32], index: 9, kind: input, shape index: {}]   ;;  %s3295_s10 = inlined_call_operand.hbm [shape: f32[1,32], index: 10, kind: input, shape index: {}]   ;;  %s3296_s11 = inlined_call_operand.hbm [shape: f32[2,8,32], index: 11, kind: output, shape index: {}]  }
   0x1   :  { %3318 = sst [smem:[#allocation37_spill]] %s3285_s0 }
   0x2   :  { %3319 = sst [smem:[#allocation38_spill]] %s3286_s1 }
   0x3   :  { %3320 = sst [smem:[#allocation39_spill]] %s3287_s2 }
   0x4   :  { %3321 = sst [smem:[#allocation40_spill]] %s3288_s3 }
   0x5   :  { %3322 = sst [smem:[#allocation41_spill]] %s3290_s5 }
   0x6   :  { %3323 = sst [smem:[#allocation42_spill]] %s3292_s7 }
   0x7   :  { %3324 = sst [smem:[#allocation43_spill]] %s3294_s9 }
   0x8   :  { %3325 = sst [smem:[#allocation44_spill]] %s3296_s11 }
   0x9   :  { %16 = vsyncpa [#allocation6], 0 }
   0xa   :  { %18 = vsyncpa [#allocation6 + $0x1], 0 }
   0xb   :  { %19 = vsyncpa [#allocation9], 0 }
   0xc   :  { %21 = vsyncpa [#allocation9 + $0x1], 0 }
   0xd   :  { %22 = vsyncpa [#allocation12], 0 }
   0xe   :  { %23 = vsyncpa [#allocation15], 0 }
   0xf   :  { %24 = vsyncpa [#allocation18], 0 }
  0x10   :  { %25 = vsyncpa [#allocation21], 0 }
  0x11   :  { %26 = vsyncpa [#allocation7], 0 }
  0x12   :  { %28 = vsyncpa [#allocation7 + $0x1], 0  ;;  %s2731_s17 = smov 0   ;;  %s2733_s18 = smov 0  }
  0x13   :  { %s2735_s19 = smov 0   ;;  %s2737_s20 = smov 0  }
  0x14   :  { %s2739_s21 = smov 0   ;;  %s2741_s22 = smov 0  }
  0x15 LB: > { %3326 = sst [smem:[#allocation31_spill]] %s2638_s20  ;;  %s2762_s23 = sadd.s32 4294967295, %s2646_s22   ;;  %s2646_s22 = sphi %s2741_s22, %s34_s22   ;;  %s2642_s21 = sphi %s2739_s21, %s3375_s21   ;;  %s2638_s20 = sphi %s2737_s20, %s3379_s20   ;;  %s2634_s19 = sphi %s2735_s19, %s3378_s19   ;;  %s2630_s18 = sphi %s2733_s18, %s3377_s18   ;;  %s2626_s17 = sphi %s2731_s17, %s3376_s17  }
  0x16   : > { %3327 = sst [smem:[#allocation32_spill]] %s2642_s21  ;;  %p1853_p0 = scmp.ge.s32.totalorder %s2646_s22, 1 }
  0x17   : > { %3328 = sst [smem:[#allocation33_spill]] %s2646_s22  ;;  %p3301_p1 = scmp.eq.s32.totalorder %s2762_s23, 0 }
  0x18   : > { %p327_p2 = scmp.lt.s32.totalorder %s2646_s22, 3  ;;  %s2648_s25 = smov [#allocation11]  }
  0x19   : > { %s339_s26 = sshll.u32 %s2648_s25, 4  ;;  %s2649_s28 = smov [#allocation14]   ;;  %s2771_s26 = int_to_ptr.vmem [resolvable:$true] %s339_s26 }
  0x1a   : > { %p2767_p3 = pnand %p1853_p0, %p327_p2  ;;  %s363_s29 = sshll.u32 %s2649_s28, 4  ;;  %s2782_s29 = int_to_ptr.vmem [resolvable:$true] %s363_s29 }
  0x1b   : > { %s2650_s30 = smov [#allocation17]   ;;  %s3332_s3 = sld [smem:[#allocation40_spill]] }
  0x1c   : > { %s3329_s24 = scalar_select %p2767_p3, 1, 0 }
  0x1d   : > { %p2090_p4 = pneg %p2767_p3  ;;  %s2784_s12 = sshll.u32 %s2650_s30, 4  ;;  %s388_s12 = int_to_ptr.vmem [resolvable:$true] %s2784_s12 }
  0x1e   : > { %3330 = sst [smem:[#allocation34_spill]] %s3329_s24 }
  0x1f   : > { %p2778_p6 = pnand %p2090_p4, %p3301_p1 }
  0x21   : > { %s3331_s27 = scalar_select %p2778_p6, 1, 0 }
  0x22   : > { %s2230_s15 = scalar_lea.hbm %s3332_s3, 512  ;;  %p2794_p8 = pneg %p2778_p6 }
  0x23   : > { %p2231_p7 = scmp.ne.s32.totalorder %s3332_s3, %s2230_s15  ;;  %p2237_p11 = scmp.lt.u32.totalorder %s2230_s15, %s3332_s3 }
  0x24   : > { %s3333_s11 = scalar_select %p2794_p8, 1, 0 }
  0x25   : > { %p2233_p9 = pnand %p2794_p8, %p2231_p7 }
  0x27   : > { %p2234_p10 = pneg %p2233_p9 }
  0x29   : > { %p2239_p12 = pnand %p2237_p11, %p2234_p10 }
  0x2b   : > { %2242 = shalt.err (!%p2239_p12)
}
  0x2c   : > { %s2243_s13 = scalar_lea.vmem %s2771_s26, 512  ;;  %p2251_p4 = scmp.lt.s32.totalorder %s2771_s26, %s2771_s26 }
  0x2d   : > { %p2244_p13 = scmp.ne.s32.totalorder %s2771_s26, %s2243_s13  ;;  %p2252_p5 = scmp.lt.s32.totalorder %s2243_s13, %s2243_s13 }
  0x2f   : > { %p2246_p0 = pnand %p2244_p13, %p2794_p8  ;;  %p2253_p7 = por %p2252_p5, %p2251_p4 }
  0x31   : > { %p2247_p2 = pneg %p2246_p0 }
  0x33   : > { %p2254_p9 = pnand %p2253_p7, %p2247_p2 }
  0x35   : > { %2257 = shalt.err (!%p2254_p9)
}
  0x36   : > { %s2651_s14 = smov 128   ;;  %s2652_s15 = smov 8  }
  0x37   : > { %2093 = dma.hbm_to_vmem [thread:$0]  (!%p2778_p6), %s3332_s3, 512, %s2771_s26, [#allocation12], %s2651_s14, %s2651_s14, %s2652_s15  }
  0x38   : > { %s3334_s5 = sld [smem:[#allocation41_spill]] }
  0x3e   : > { %s2258_s13 = scalar_lea.hbm %s3334_s5, 512 }
  0x3f   : > { %p2259_p5 = scmp.ne.s32.totalorder %s3334_s5, %s2258_s13  ;;  %p2265_p12 = scmp.lt.u32.totalorder %s2258_s13, %s3334_s5 }
  0x41   : > { %p2261_p10 = pnand %p2259_p5, %p2794_p8 }
  0x43   : > { %p2262_p11 = pneg %p2261_p10 }
  0x45   : > { %p2267_p13 = pnand %p2265_p12, %p2262_p11 }
  0x47   : > { %2270 = shalt.err (!%p2267_p13)
}
  0x48   : > { %s2271_s26 = scalar_lea.vmem %s2782_s29, 512  ;;  %p2279_p7 = scmp.lt.s32.totalorder %s2782_s29, %s2782_s29 }
  0x49   : > { %p2272_p0 = scmp.ne.s32.totalorder %s2782_s29, %s2271_s26  ;;  %p2280_p9 = scmp.lt.s32.totalorder %s2271_s26, %s2271_s26 }
  0x4b   : > { %p2274_p2 = pnand %p2272_p0, %p2794_p8  ;;  %p2281_p5 = por %p2280_p9, %p2279_p7 }
  0x4d   : > { %p2275_p4 = pneg %p2274_p2 }
  0x4f   : > { %p2282_p10 = pnand %p2281_p5, %p2275_p4 }
  0x51   : > { %2285 = shalt.err (!%p2282_p10)
}
  0x52   : > { %2099 = dma.hbm_to_vmem [thread:$0]  (!%p2778_p6), %s3334_s5, 512, %s2782_s29, [#allocation15], %s2651_s14, %s2651_s14, %s2652_s15  }
  0x53   : > { %s3335_s7 = sld [smem:[#allocation42_spill]] }
  0x59   : > { %s2286_s16 = scalar_lea.hbm %s3335_s7, 512 }
  0x5a   : > { %p2287_p11 = scmp.ne.s32.totalorder %s3335_s7, %s2286_s16  ;;  %p2293_p0 = scmp.lt.u32.totalorder %s2286_s16, %s3335_s7 }
  0x5c   : > { %p2289_p12 = pnand %p2287_p11, %p2794_p8 }
  0x5e   : > { %p2290_p13 = pneg %p2289_p12 }
  0x60   : > { %p2295_p2 = pnand %p2293_p0, %p2290_p13 }
  0x62   : > { %2298 = shalt.err (!%p2295_p2)
}
  0x63   : > { %s2299_s26 = scalar_lea.vmem %s388_s12, 512  ;;  %p2307_p5 = scmp.lt.s32.totalorder %s388_s12, %s388_s12 }
  0x64   : > { %p2300_p4 = scmp.ne.s32.totalorder %s388_s12, %s2299_s26  ;;  %p2308_p10 = scmp.lt.s32.totalorder %s2299_s26, %s2299_s26 }
  0x66   : > { %p2302_p7 = pnand %p2300_p4, %p2794_p8  ;;  %p2309_p1 = por %p2308_p10, %p2307_p5 }
  0x68   : > { %p2303_p9 = pneg %p2302_p7 }
  0x6a   : > { %p2310_p3 = pnand %p2309_p1, %p2303_p9 }
  0x6c   : > { %2313 = shalt.err (!%p2310_p3)
}
  0x6d   : > { %2105 = dma.hbm_to_vmem [thread:$0]  (!%p2778_p6), %s3335_s7, 512, %s388_s12, [#allocation18], %s2651_s14, %s2651_s14, %s2652_s15  }
  0x6e   : > { %s2653_s2 = smov [#allocation20]   ;;  %s3336_s9 = sld [smem:[#allocation43_spill]] }
  0x6f   : > { %s411_s20 = sshll.u32 %s2653_s2, 4  ;;  %s412_s20 = int_to_ptr.vmem [resolvable:$true] %s411_s20 }
  0x74   : > { %s2314_s25 = scalar_lea.hbm %s3336_s9, 512 }
  0x75   : > { %p2315_p1 = scmp.ne.s32.totalorder %s3336_s9, %s2314_s25  ;;  %p2321_p12 = scmp.lt.u32.totalorder %s2314_s25, %s3336_s9 }
  0x77   : > { %p2317_p3 = pnand %p2315_p1, %p2794_p8 }
  0x79   : > { %p2318_p11 = pneg %p2317_p3 }
  0x7b   : > { %p2323_p13 = pnand %p2321_p12, %p2318_p11 }
  0x7d   : > { %2326 = shalt.err (!%p2323_p13)
}
  0x7e   : > { %s2327_s12 = scalar_lea.vmem %s412_s20, 512  ;;  %p2335_p7 = scmp.lt.s32.totalorder %s412_s20, %s412_s20 }
  0x7f   : > { %p2328_p0 = scmp.ne.s32.totalorder %s412_s20, %s2327_s12  ;;  %p2336_p9 = scmp.lt.s32.totalorder %s2327_s12, %s2327_s12 }
  0x81   : > { %p2330_p2 = pnand %p2328_p0, %p2794_p8  ;;  %p2337_p5 = por %p2336_p9, %p2335_p7 }
  0x83   : > { %p2331_p4 = pneg %p2330_p2 }
  0x85   : > { %p2338_p10 = pnand %p2337_p5, %p2331_p4 }
  0x87   : > { %2341 = shalt.err (!%p2338_p10)
}
  0x88   : > { %2111 = dma.hbm_to_vmem [thread:$0]  (!%p2778_p6), %s3336_s9, 512, %s412_s20, [#allocation21], %s2651_s14, %s2651_s14, %s2652_s15  }
  0x89   : > { %s1852_s2 = sadd.s32 4294967294, %s2646_s22   ;;  %s46_s24 = sadd.s32 1, %s2642_s21 }
  0x8a   : > { %p48_p1 = scmp.ge.s32.totalorder %s46_s24, 2  ;;  %s55_s16 = sadd.s32 1, %s2634_s19 }
  0x8b   : > { %p62_p3 = scmp.ne.s32.totalorder %s2634_s19, %s2630_s18  ;;  %p63_p11 = scmp.eq.s32.totalorder %s2646_s22, 0 }
  0x8c   : > { %s3381_s24 = smov (%p48_p1, %s46_s24), 0  ;;  %p68_p13 = scmp.ne.s32.totalorder %s2630_s18, %s2626_s17 }
  0x8d   : > { %3337 = sst [smem:[#allocation35_spill]] %s3381_s24  ;;  %p2895_p12 = por %p63_p11, %p62_p3 }
  0x8e   : > { %s50_s14 = ssub.s32 %s2642_s21, %s3381_s24  ;;  %p314_p0 = scmp.eq.s32.totalorder %s2762_s23, 1 }
  0x8f   : > { %p53_p2 = scmp.eq.s32.totalorder %s50_s14, 0  ;;  %p3339_p4 = scmp.eq.s32.totalorder %s2762_s23, 0 }
  0x90   : > { %p2910_p9 = por %p314_p0, %p62_p3  ;;  %p320_p5 = scmp.eq.s32.totalorder %s1852_s2, 1 }
  0x91   : > { %p2906_p7 = por %p3339_p4, %p68_p13  ;;  %p2137_p1 = scmp.lt.s32.totalorder %s2646_s22, 2 }
  0x92   : > { %s3341_s20 = scalar_select %p2910_p9, 1, 0 }
  0x93   : > { %s3340_s15 = scalar_select %p2906_p7, 1, 0 }
  0x94   : > { %s2915_s28 = scalar_select %p53_p2, %s2634_s19, %s55_s16  }
  0x95   : > { %p2917_p10 = por %p320_p5, %p68_p13  ;;  %s3303_s13 = sand.u32 1, %s2634_s19  }
  0x96   : > { %3342 = sst [smem:[#allocation36_spill]] %s2915_s28  ;;  %s2924_s26 = sshll.u32 %s2642_s21, 7 }
  0x97   : > { %s3343_s30 = scalar_select %p2917_p10, 1, 0 }
  0x98   : > { %s2928_s12 = sshll.u32 %s3303_s13, 3  ;;  %p2932_p3 = pnand %p2137_p1, %p2895_p12 }
  0x99   : > { %s455_s0 = sand.u32 1, %s2646_s22   ;;  %s3345_s1 = sld [smem:[#allocation38_spill]] }
  0x9a   : > { %s3344_s29 = scalar_select %p2932_p3, 1, 0 }
  0x9b   : > { %s459_s3 = scalar_lea.vmem [#allocation8], %s2928_s12  ;;  %s2946_s25 = scalar_lea.sflag [#allocation9], %s455_s0 }
  0x9c   : > { %s466_s13 = sshll.u32 %s459_s3, 4  ;;  %p2952_p12 = pneg %p2932_p3  ;;  %s2944_s13 = int_to_ptr.vmem [resolvable:$true] %s466_s13 }
  0x9e   : > { %s3346_s7 = scalar_select %p2952_p12, 1, 0 }
  0x9f   : > { %s2941_s14 = scalar_lea.hbm %s3345_s1, %s2924_s26  ;;  %s2347_s9 = scalar_lea.hbm %s3345_s1, 256 }
  0xa0   : > { %s2342_s5 = scalar_lea.hbm %s2941_s14, 128  ;;  %p2348_p2 = scmp.lt.u32.totalorder %s2941_s14, %s3345_s1 }
  0xa1   : > { %p2343_p11 = scmp.ne.s32.totalorder %s2941_s14, %s2342_s5  ;;  %p2349_p4 = scmp.lt.u32.totalorder %s2347_s9, %s2342_s5 }
  0xa2   : > { %p2351_p1 = scmp.lt.u32.totalorder %s2342_s5, %s2941_s14 }
  0xa3   : > { %p2345_p13 = pnand %p2952_p12, %p2343_p11  ;;  %p2350_p5 = por %p2349_p4, %p2348_p2 }
  0xa5   : > { %p2346_p0 = pneg %p2345_p13  ;;  %p2352_p10 = por %p2351_p1, %p2350_p5 }
  0xa7   : > { %p2353_p9 = pnand %p2352_p10, %p2346_p0 }
  0xa9   : > { %2356 = shalt.err (!%p2353_p9)
}
  0xaa   : > { %s2357_s0 = scalar_lea.vmem %s2944_s13, 128  ;;  %s2654_s2 = smov [#allocation8]  }
  0xab   : > { %p2358_p11 = scmp.ne.s32.totalorder %s2944_s13, %s2357_s0  ;;  %s2362_s16 = sshll.u32 %s2654_s2, 4  ;;  %s2363_s16 = int_to_ptr.vmem [resolvable:$false] %s2362_s16 }
  0xac   : > { %s2364_s24 = scalar_lea.vmem %s2363_s16, 256  ;;  %p2365_p6 = scmp.lt.s32.totalorder %s2944_s13, %s2363_s16 }
  0xad   : > { %p2360_p13 = pnand %p2358_p11, %p2952_p12  ;;  %p2366_p8 = scmp.lt.s32.totalorder %s2364_s24, %s2357_s0 }
  0xaf   : > { %p2361_p7 = pneg %p2360_p13  ;;  %p2367_p2 = por %p2366_p8, %p2365_p6 }
  0xb1   : > { %p2368_p4 = pnand %p2367_p2, %p2361_p7 }
  0xb3   : > { %2371 = shalt.err (!%p2368_p4)
}
  0xb4   : > { %2121 = dma.hbm_to_vmem [thread:$0]  (!%p2932_p3), %s2941_s14, 128, %s2944_s13, %s2946_s25  }
  0xb5   : > { %s2655_s5 = smov [#allocation13]   ;;  %s2656_s3 = smov [#allocation16]  }
  0xb6   : > { %s353_s9 = sshll.u32 %s2655_s5, 4  ;;  %s377_s1 = sshll.u32 %s2656_s3, 4  ;;  %s354_s9 = int_to_ptr.vmem [resolvable:$true] %s353_s9  ;;  %s378_s1 = int_to_ptr.vmem [resolvable:$true] %s377_s1 }
  0xb7   : > { %s2372_s16 = scalar_lea.hbm %s3289_s4, 16  ;;  %p3347_p8 = scmp.ne.s32.totalorder %s3333_s11, 0 }
  0xb8   : > { %p2373_p6 = scmp.ne.s32.totalorder %s3289_s4, %s2372_s16  ;;  %p2379_p10 = scmp.lt.u32.totalorder %s2372_s16, %s3289_s4 }
  0xba   : > { %p2375_p7 = pnand %p2373_p6, %p3347_p8 }
  0xbc   : > { %p2376_p9 = pneg %p2375_p7 }
  0xbe   : > { %p2381_p0 = pnand %p2379_p10, %p2376_p9 }
  0xc0   : > { %2384 = shalt.err (!%p2381_p0)
}
  0xc1   : > { %s2385_s13 = scalar_lea.vmem %s354_s9, 16  ;;  %s2392_s21 = scalar_lea.vmem %s354_s9, 32 }
  0xc2   : > { %p2386_p5 = scmp.ne.s32.totalorder %s354_s9, %s2385_s13  ;;  %p2393_p13 = scmp.lt.s32.totalorder %s354_s9, %s354_s9 }
  0xc3   : > { %p2394_p2 = scmp.lt.s32.totalorder %s2392_s21, %s2385_s13 }
  0xc4   : > { %p2388_p1 = pnand %p2386_p5, %p3347_p8 }
  0xc5   : > { %p2395_p4 = por %p2394_p2, %p2393_p13 }
  0xc6   : > { %p2389_p11 = pneg %p2388_p1 }
  0xc8   : > { %p2396_p3 = pnand %p2395_p4, %p2389_p11 }
  0xca   : > { %2399 = shalt.err (!%p2396_p3)
}
  0xcb   : > { %p3348_p6 = scmp.ne.s32.totalorder %s3331_s27, 0  ;;  %s2400_s3 = scalar_lea.hbm %s3291_s6, 16 }
  0xcc   : > { %p2401_p7 = scmp.ne.s32.totalorder %s3291_s6, %s2400_s3  ;;  %p2407_p3 = scmp.lt.u32.totalorder %s2400_s3, %s3291_s6 }
  0xcd   : > { %2096 = dma.hbm_to_vmem [thread:$0]  (!%p3348_p6), %s3289_s4, 16, %s354_s9, [#allocation12]  }
  0xce   : > { %p2403_p9 = pnand %p2401_p7, %p3347_p8 }
  0xd0   : > { %p2404_p10 = pneg %p2403_p9 }
  0xd2   : > { %p2409_p0 = pnand %p2407_p3, %p2404_p10 }
  0xd4   : > { %2412 = shalt.err (!%p2409_p0)
}
  0xd5   : > { %s2413_s13 = scalar_lea.vmem %s378_s1, 16  ;;  %s2420_s9 = scalar_lea.vmem %s378_s1, 32 }
  0xd6   : > { %p2414_p5 = scmp.ne.s32.totalorder %s378_s1, %s2413_s13  ;;  %p2421_p13 = scmp.lt.s32.totalorder %s378_s1, %s378_s1 }
  0xd7   : > { %p2422_p2 = scmp.lt.s32.totalorder %s2420_s9, %s2413_s13 }
  0xd8   : > { %p2416_p1 = pnand %p2414_p5, %p3347_p8 }
  0xd9   : > { %p2423_p4 = por %p2422_p2, %p2421_p13 }
  0xda   : > { %p2417_p11 = pneg %p2416_p1 }
  0xdc   : > { %p2424_p12 = pnand %p2423_p4, %p2417_p11 }
  0xde   : > { %2427 = shalt.err (!%p2424_p12)
}
  0xdf   : > { %2102 = dma.hbm_to_vmem [thread:$0]  (!%p3348_p6), %s3291_s6, 16, %s378_s1, [#allocation15]  }
  0xe0   : > { %s2657_s5 = smov [#allocation19]   ;;  %s2658_s28 = smov [#allocation22]  }
  0xe1   : > { %s401_s22 = sshll.u32 %s2657_s5, 4  ;;  %s425_s3 = sshll.u32 %s2658_s28, 4  ;;  %s402_s22 = int_to_ptr.vmem [resolvable:$true] %s401_s22  ;;  %s426_s3 = int_to_ptr.vmem [resolvable:$true] %s425_s3 }
  0xe2   : > { %s2428_s0 = scalar_lea.hbm %s3293_s8, 16 }
  0xe3   : > { %p2429_p12 = scmp.ne.s32.totalorder %s3293_s8, %s2428_s0  ;;  %p2435_p10 = scmp.lt.u32.totalorder %s2428_s0, %s3293_s8 }
  0xe5   : > { %p2431_p7 = pnand %p2429_p12, %p3347_p8 }
  0xe7   : > { %p2432_p9 = pneg %p2431_p7 }
  0xe9   : > { %p2437_p3 = pnand %p2435_p10, %p2432_p9 }
  0xeb   : > { %2440 = shalt.err (!%p2437_p3)
}
  0xec   : > { %s2441_s1 = scalar_lea.vmem %s402_s22, 16  ;;  %s2448_s14 = scalar_lea.vmem %s402_s22, 32 }
  0xed   : > { %p2442_p0 = scmp.ne.s32.totalorder %s402_s22, %s2441_s1  ;;  %p2449_p11 = scmp.lt.s32.totalorder %s402_s22, %s402_s22 }
  0xee   : > { %p2450_p13 = scmp.lt.s32.totalorder %s2448_s14, %s2441_s1 }
  0xef   : > { %p2444_p5 = pnand %p2442_p0, %p3347_p8 }
  0xf0   : > { %p2451_p2 = por %p2450_p13, %p2449_p11 }
  0xf1   : > { %p2445_p1 = pneg %p2444_p5 }
  0xf3   : > { %p2452_p4 = pnand %p2451_p2, %p2445_p1 }
  0xf5   : > { %2455 = shalt.err (!%p2452_p4)
}
  0xf6   : > { %2108 = dma.hbm_to_vmem [thread:$0]  (!%p3348_p6), %s3293_s8, 16, %s402_s22, [#allocation18]  }
  0xf7   : > { %s2456_s0 = scalar_lea.hbm %s3295_s10, 16 }
  0xf8   : > { %p2457_p12 = scmp.ne.s32.totalorder %s3295_s10, %s2456_s0  ;;  %p2463_p10 = scmp.lt.u32.totalorder %s2456_s0, %s3295_s10 }
  0xfa   : > { %p2459_p7 = pnand %p2457_p12, %p3347_p8 }
  0xfc   : > { %p2460_p9 = pneg %p2459_p7 }
  0xfe   : > { %p2465_p3 = pnand %p2463_p10, %p2460_p9 }
 0x100   : > { %2468 = shalt.err (!%p2465_p3)
}
 0x101   : > { %s2469_s1 = scalar_lea.vmem %s426_s3, 16  ;;  %s2476_s22 = scalar_lea.vmem %s426_s3, 32 }
 0x102   : > { %p2470_p0 = scmp.ne.s32.totalorder %s426_s3, %s2469_s1  ;;  %p2477_p11 = scmp.lt.s32.totalorder %s426_s3, %s426_s3 }
 0x103   : > { %p2478_p13 = scmp.lt.s32.totalorder %s2476_s22, %s2469_s1 }
 0x104   : > { %p2472_p5 = pnand %p2470_p0, %p3347_p8 }
 0x105   : > { %p2479_p2 = por %p2478_p13, %p2477_p11 }
 0x106   : > { %p2473_p1 = pneg %p2472_p5 }
 0x108   : > { %p2480_p4 = pnand %p2479_p2, %p2473_p1 }
 0x10a   : > { %2483 = shalt.err (!%p2480_p4)
}
 0x10b   : > { %2114 = dma.hbm_to_vmem [thread:$0]  (!%p3348_p6), %s3295_s10, 16, %s426_s3, [#allocation21]  }
 0x10c   : > { %s3349_s2 = sld [smem:[#allocation37_spill]]  ;;  %s440_s0 = scalar_lea.vmem [#allocation5], %s2928_s12 }
 0x10d   : > { %s448_s27 = sshll.u32 %s440_s0, 4  ;;  %s3350_s9 = sld [smem:[#allocation39_spill]]  ;;  %s3055_s27 = int_to_ptr.vmem [resolvable:$true] %s448_s27 }
 0x10e   : > { %s3351_s1 = sand.u32 1, %s2634_s19   ;;  %p3352_p6 = scmp.ne.s32.totalorder %s3346_s7, 0 }
 0x10f   : > { %s437_s3 = scalar_lea.sflag [#allocation6], %s3351_s1 }
 0x112   : > { %s3052_s16 = scalar_lea.hbm %s3349_s2, %s2924_s26  ;;  %s2489_s11 = scalar_lea.hbm %s3349_s2, 256 }
 0x113   : > { %s3061_s21 = scalar_lea.hbm %s3350_s9, %s2924_s26  ;;  %s2484_s22 = scalar_lea.hbm %s3052_s16, 128 }
 0x114   : > { %p2485_p8 = scmp.ne.s32.totalorder %s3052_s16, %s2484_s22  ;;  %p2490_p9 = scmp.lt.u32.totalorder %s3052_s16, %s3349_s2 }
 0x115   : > { %p2491_p10 = scmp.lt.u32.totalorder %s2489_s11, %s2484_s22  ;;  %p2493_p0 = scmp.lt.u32.totalorder %s2484_s22, %s3052_s16 }
 0x116   : > { %p2487_p12 = pnand %p2485_p8, %p3352_p6 }
 0x117   : > { %p2492_p3 = por %p2491_p10, %p2490_p9 }
 0x118   : > { %p2488_p7 = pneg %p2487_p12 }
 0x119   : > { %p2494_p5 = por %p2493_p0, %p2492_p3 }
 0x11b   : > { %p2495_p1 = pnand %p2494_p5, %p2488_p7 }
 0x11d   : > { %2498 = shalt.err (!%p2495_p1)
}
 0x11e   : > { %s2499_s26 = scalar_lea.vmem %s3055_s27, 128  ;;  %s2659_s24 = smov [#allocation5]  }
 0x11f   : > { %p2500_p11 = scmp.ne.s32.totalorder %s3055_s27, %s2499_s26  ;;  %s2504_s13 = sshll.u32 %s2659_s24, 4  ;;  %s2505_s13 = int_to_ptr.vmem [resolvable:$false] %s2504_s13 }
 0x120   : > { %s2506_s1 = scalar_lea.vmem %s2505_s13, 256  ;;  %p2507_p4 = scmp.lt.s32.totalorder %s3055_s27, %s2505_s13 }
 0x121   : > { %p2502_p13 = pnand %p2500_p11, %p3352_p6  ;;  %p2508_p8 = scmp.lt.s32.totalorder %s2506_s1, %s2499_s26 }
 0x123   : > { %p2503_p2 = pneg %p2502_p13  ;;  %p2509_p12 = por %p2508_p8, %p2507_p4 }
 0x125   : > { %p2510_p9 = pnand %p2509_p12, %p2503_p2 }
 0x127   : > { %2513 = shalt.err (!%p2510_p9)
}
 0x128   : > { %p3353_p7 = scmp.ne.s32.totalorder %s3344_s29, 0  ;;  %s477_s22 = scalar_lea.vmem [#allocation10], %s2928_s12 }
 0x129   : > { %s484_s14 = sshll.u32 %s477_s22, 4  ;;  %s2514_s5 = scalar_lea.hbm %s3061_s21, 128  ;;  %s485_s14 = int_to_ptr.vmem [resolvable:$true] %s484_s14 }
 0x12a   : > { %2118 = dma.hbm_to_vmem [thread:$0]  (!%p3353_p7), %s3052_s16, 128, %s3055_s27, %s437_s3  }
 0x12b   : > { %p2515_p10 = scmp.ne.s32.totalorder %s3061_s21, %s2514_s5  ;;  %s2519_s0 = scalar_lea.hbm %s3350_s9, 256 }
 0x12c   : > { %p2520_p5 = scmp.lt.u32.totalorder %s3061_s21, %s3350_s9  ;;  %p2521_p1 = scmp.lt.u32.totalorder %s2519_s0, %s2514_s5 }
 0x12d   : > { %p2517_p3 = pnand %p2515_p10, %p3352_p6  ;;  %p2523_p13 = scmp.lt.u32.totalorder %s2514_s5, %s3061_s21 }
 0x12e   : > { %p2522_p11 = por %p2521_p1, %p2520_p5 }
 0x12f   : > { %p2518_p0 = pneg %p2517_p3 }
 0x130   : > { %p2524_p2 = por %p2523_p13, %p2522_p11 }
 0x132   : > { %p2525_p4 = pnand %p2524_p2, %p2518_p0 }
 0x134   : > { %2528 = shalt.err (!%p2525_p4)
}
 0x135   : > { %s2529_s12 = scalar_lea.vmem %s485_s14, 128  ;;  %s2660_s16 = smov [#allocation10]  }
 0x136   : > { %p2530_p8 = scmp.ne.s32.totalorder %s485_s14, %s2529_s12  ;;  %s2534_s27 = sshll.u32 %s2660_s16, 4  ;;  %s2535_s27 = int_to_ptr.vmem [resolvable:$false] %s2534_s27 }
 0x137   : > { %s2536_s3 = scalar_lea.vmem %s2535_s27, 256  ;;  %p2537_p10 = scmp.lt.s32.totalorder %s485_s14, %s2535_s27 }
 0x138   : > { %p2532_p12 = pnand %p2530_p8, %p3352_p6  ;;  %p2538_p3 = scmp.lt.s32.totalorder %s2536_s3, %s2529_s12 }
 0x13a   : > { %p2533_p9 = pneg %p2532_p12  ;;  %p2539_p7 = por %p2538_p3, %p2537_p10 }
 0x13c   : > { %p2540_p1 = pnand %p2539_p7, %p2533_p9 }
 0x13e   : > { %2543 = shalt.err (!%p2540_p1)
}
 0x13f   : > { %p3354_p5 = scmp.ne.s32.totalorder %s3344_s29, 0  ;;  %s3355_s13 = sld [smem:[#allocation34_spill]] }
 0x141   : > { %2124 = dma.hbm_to_vmem [thread:$0]  (!%p3354_p5), %s3061_s21, 128, %s485_s14, %s2946_s25  }
 0x145   : > { %p3356_p0 = scmp.ne.s32.totalorder %s3355_s13, 0 }
 0x146   : > { %s3108_s7 = sand.u32 (!%p3356_p0), 1, %s2630_s18   ;;  %p3357_p6 = scmp.ne.s32.totalorder (!%p3356_p0), %s3340_s15, 0 }
 0x147   : > { %493 = sbr.rel (%p3356_p0) target bundleno = 2271 (0x8df), region = 64  ;;  %s3111_s1 = sshll.u32 (!%p3356_p0), %s3108_s7, 3 }
 0x148   : > { %s496_s22 = scalar_lea.sflag (!%p3356_p0), [#allocation6], %s3108_s7  ;;  %s499_s5 = scalar_lea.vmem (!%p3356_p0), [#allocation5], %s3111_s1 }
 0x14e   : > { %2597 = dma.done.wait (%p3357_p6), %s496_s22, 128  }
 0x14f   : > { %2599 = vsyncadd (%p3357_p6), %s496_s22, 4294967168  ;;  %s504_s29 = sand.u32 1, %s2762_s23   ;;  %s508_s21 = scalar_lea.vmem [#allocation8], %s3111_s1 }
 0x150   : > { %s505_s25 = scalar_lea.sflag [#allocation9], %s504_s29 }
 0x151   : > { %2601 = dma.done.wait (%p3357_p6), %s505_s25, 256  }
 0x152   : > { %2603 = vsyncadd (%p3357_p6), %s505_s25, 4294967040  ;;  %s517_s14 = scalar_lea.vmem [#allocation10], %s3111_s1  ;;  %p3358_p7 = scmp.eq.s32.totalorder %s2762_s23, 0 }
 0x154   : > { %2605 = dma.done.wait (%p3358_p7), [#allocation12], 528   ;;  %p3359_p11 = pmov %p3358_p7 }
 0x155   : > { %p3360_p13 = pmov %p3358_p7 }
 0x156   : > { %2607 = vsyncadd (%p3359_p11), [#allocation12], 4294966768 }
 0x157   : > { %2609 = dma.done.wait (%p3360_p13), [#allocation15], 528   ;;  %p3361_p2 = pmov %p3358_p7 }
 0x159   : > { %2611 = vsyncadd (%p3361_p2), [#allocation15], 4294966768  ;;  %p3362_p4 = pmov %p3361_p2 }
 0x15a   : > { %p3363_p8 = pmov %p3361_p2 }
 0x15b   : > { %2613 = dma.done.wait (%p3362_p4), [#allocation18], 528  }
 0x15c   : > { %2615 = vsyncadd (%p3363_p8), [#allocation18], 4294966768  ;;  %p3364_p12 = pmov %p3361_p2 }
 0x15d   : > { %p3365_p9 = pmov %p3361_p2 }
 0x15e   : > { %2617 = dma.done.wait (%p3364_p12), [#allocation21], 528  }
 0x15f   : > { %2619 = vsyncadd (%p3365_p9), [#allocation21], 4294966768  ;;  %v2661_v0 = vmov 0.0|0.0   ;;  %vm2662_vm0 = vmmov 0   ;;  %v2663_v1 = vmov 0.0   ;;  %v603_v2 = vld [vmem:[#allocation14] sm:$0xff] }
 0x160   : > { %2026 = vmatprep.subr.bf16.mxu0 %v2661_v0  ;;  %1950 = vmatprep.mubr.msk.f32.mxu0 %vm2662_vm0, %v2663_v1  ;;  %v604_v3 = vld [vmem:[#allocation14 + $0x8] sm:$0xff]  ;;  %v605_v4 = vld [vmem:[#allocation14 + $0x10] sm:$0xff]  ;;  %v606_v6 = vld [vmem:[#allocation14 + $0x18] sm:$0xff]  ;;  %vm614_vm1 = vcmask 261120   ;;  %vm864_vm2 = vcmask 64512   ;;  %s2664_s23 = smov 120  }
 0x161   : > { %2032 = vmatprep.subr.bf16.mxu1 %v2661_v0  ;;  %1961 = vmatprep.mubr.msk.f32.mxu1 %vm2662_vm0, %v2663_v1  ;;  %v2027_v5 = vpack.c.bf16 %v604_v3, %v603_v2  ;;  %v2030_v7 = vpack.c.bf16 %v606_v6, %v605_v4  ;;  %v690_v8 = vld [vmem:[#allocation17] sm:$0xff]  ;;  %v691_v9 = vld [vmem:[#allocation17 + $0x8] sm:$0xff]  ;;  %v779_v16 = vld [vmem:[#allocation11 + $0x18] sm:$0xff]  ;;  %s2665_s15 = smov 112   ;;  %s2666_s11 = smov 104   ;;  %vm1199_vm3 = vcmask 130112  }
 0x162   : > { %v776_v10 = vld [vmem:[#allocation11] sm:$0xff]  ;;  %v777_v11 = vld [vmem:[#allocation11 + $0x8] sm:$0xff]  ;;  %v2033_v12 = vpack.c.bf16 %v691_v9, %v690_v8  ;;  %v778_v15 = vld [vmem:[#allocation11 + $0x10] sm:$0xff]  ;;  %s2667_s28 = smov 8   ;;  %s2668_s0 = smov 16   ;;  %vm1374_vm4 = vcmask 195712  }
 0x163   : > { %2028 = vmatpush3.bf16.msra.mxu0 %v2027_v5  ;;  %v602_v13 = vld [vmem:[%s508_s21] sm:$0xff]  ;;  %v2039_v14 = vpack.c.bf16 %v777_v11, %v776_v10  ;;  %v2042_v17 = vpack.c.bf16 %v779_v16, %v778_v15  ;;  %v775_v18 = vld [vmem:[%s499_s5] sm:$0xff]  ;;  %s3366_s26 = sld [smem:[#allocation31_spill]]  ;;  %s2669_s24 = smov 24   ;;  %vm1549_vm5 = vcmask 261312  }
 0x164   : > { %2029 = vmatprep.subr.bf16.mxu0 %v2661_v0  ;;  %2034 = vmatpush3.bf16.msra.mxu1 %v2033_v12  ;;  %v692_v19 = vld [vmem:[#allocation17 + $0x10] sm:$0xff]  ;;  %v693_v20 = vld [vmem:[#allocation17 + $0x18] sm:$0xff]  ;;  %v1884_v33 = vld [vmem:[#allocation19] ss:$0 sm:$0xff]  ;;  %s597_s16 = scalar_lea.vmem [#allocation23], %s3111_s1  ;;  %s3367_s22 = sld [smem:[#allocation44_spill]] }
 0x165   : > { %2035 = vmatprep.subr.bf16.mxu1 %v2661_v0  ;;  %v2036_v21 = vpack.c.bf16 %v693_v20, %v692_v19  ;;  %v689_v22 = vld [vmem:[%s517_s14] sm:$0xff]  ;;  %v1882_v23 = vld [vmem:[#allocation16] ss:$0 sm:$0xff]  ;;  %v1886_v27 = vld [vmem:[#allocation13] ss:$0 sm:$0xff]  ;;  %s1652_s27 = sshll.u32 %s597_s16, 4  ;;  %s3237_s27 = int_to_ptr.vmem [resolvable:$true] %s1652_s27 }
 0x166   : > { %s1638_s25 = scalar_lea.sflag [#allocation7], %s3108_s7  ;;  %s2544_s21 = scalar_lea.vmem %s3237_s27, 128 }
 0x167   : > { %2031 = vmatpush3.bf16.msra.mxu0 %v2030_v7  ;;  %p2545_p10 = scmp.ne.s32.totalorder %s3237_s27, %s2544_s21  ;;  %p3369_p3 = scmp.ne.s32.totalorder %s3341_s20, 0 }
 0x168   : > { %2038 = vmatprep.subr.bf16.mxu0 %v2661_v0  ;;  %2037 = vmatpush3.bf16.msra.mxu1 %v2036_v21  ;;  %s2670_s1 = smov [#allocation23]  }
 0x169   : > { %1975 = vmatprep.subr.mxu1 %v2663_v1  ;;  %s1903_s12 = sshll.u32 %s3366_s26, 7  ;;  %p2546_p1 = pnand %p2545_p10, %p3369_p3 }
 0x16a   : > { %1951 = vmatmul.mubr.msk.f32.vlgmr.msra.gmra.mrb[0].mxu0 %vm614_vm1, %v602_v13  ;;  %s3368_s5 = smov %s3367_s22  ;;  %s3235_s29 = scalar_lea.hbm %s3367_s22, %s1903_s12 }
 0x16b   : > { %2040 = vmatpush3.bf16.msra.mxu0 %v2039_v14  ;;  %1972 = vmatprep.mubr.msk.f32.mxu0 %vm2662_vm0, %v2663_v1  ;;  %p2547_p5 = pneg %p2546_p1  ;;  %s2548_s14 = sshll.u32 %s2670_s1, 4  ;;  %s2549_s14 = int_to_ptr.vmem [resolvable:$false] %s2548_s14 }
 0x16c   : > { %2041 = vmatprep.subr.bf16.mxu0 %v2661_v0  ;;  %1962 = vmatmul.mubr.msk.f32.vlgmr.msra.gmra.mrb[0].mxu1 %vm614_vm1, %v689_v22  ;;  %p2551_p0 = scmp.lt.s32.totalorder %s3237_s27, %s2549_s14 }
 0x16d   : > { %1977 = vmatprep.mubr.msk.f32.mxu1 %vm2662_vm0, %v2663_v1 }
 0x16f   : > { %2043 = vmatpush3.bf16.msra.mxu0 %v2042_v17 }
 0x170   : > { %1995 = vmatprep.subr.mxu0 %v2663_v1 }
 0x172   : > { %1973 = vmatmul.mubr.msk.f32.vlgmr.msra.gmra.mrb[2].mxu0 %vm614_vm1, %v775_v18 }
 0x173   : > { %1997 = vmatprep.mubr.msk.f32.mxu0 %vm2662_vm0, %v2663_v1 }
 0x23d   : > { %v684_v24 = vpop.f32.mrb[0].mxu0 }
 0x23e   : > { %v685_v25 = vadd.f32 %v1882_v23, %v684_v24  ;;  %v1952_v26 = vpop.f32.mrb[1].mxu0 }
 0x23f   : > { %v770_v34 = vpop.f32.mrb[0].mxu1 }
 0x240   : > { %688 = vst.msk [vmem:[#allocation2] sm:$0xff] %vm614_vm1, %v685_v25  ;;  %v771_v35 = vadd.f32 %v1884_v33, %v770_v34  ;;  %v1963_v36 = vpop.f32.mrb[1].mxu1  ;;  %v1554_v34 = vld [vmem:[#allocation20 + $0x10] sm:$0xff] }
 0x242   : > { %774 = vst.msk [vmem:[#allocation3] sm:$0xff] %vm614_vm1, %v771_v35  ;;  %v1555_v35 = vld [vmem:[#allocation20 + $0x18] sm:$0xff] }
 0x243   : > { %v2048_v36 = vpack.c.bf16 %v1555_v35, %v1554_v34 }
 0x245   : > { %v857_v28 = vpop.f32.mrb[2].mxu0 }
 0x246   : > { %v858_v29 = vadd.f32 %v1886_v27, %v857_v28  ;;  %v1974_v30 = vpop.f32.mrb[3].mxu0 }
 0x247   : > { %v1026_v31 = vld [vmem:[#allocation2] sm:$0xff] }
 0x248   : > { %v861_v32 = vmul.f32 0.35355338, %v858_v29  ;;  %1031 = vrot.lane.b32.xlu1 %v1026_v31, %s2664_s23  ;;  %1976 = vmatpush3.xpose.msk.msra.mxu1 %vm864_vm2, %v1026_v31 }
 0x249   : > { %1980 = vmatprep.subr.mxu1 %v2663_v1  ;;  %v3181_v37 = vld [vmem:[#allocation3] sm:$0xff] }
 0x24b   : > { %1978 = vmatmul.mubr.msk.f32.vlgmr.msra.gmra.mrb[2].mxu1 %vm864_vm2, %v861_v32 }
 0x24c   : > { %1028 = vrot.lane.b32.xlu1 %v861_v32, %s2664_s23  ;;  %1982 = vmatprep.mubr.msk.f32.mxu1 %vm2662_vm0, %v2663_v1 }
 0x24d   : > { %1981 = vmatpush3.msra.mxu1 %v3181_v37 }
 0x24e   : > { %1985 = vmatprep.subr.mxu1 %v2663_v1 }
 0x250   : > { %1203 = vrot.lane.b32.xlu1 %v861_v32, %s2665_s15 }
 0x254   : > { %1381 = vrot.lane.b32.xlu1 %v1026_v31, %s2666_s11 }
 0x258   : > { %1378 = vrot.lane.b32.xlu1 %v861_v32, %s2666_s11  ;;  %v1553_v32 = vld [vmem:[#allocation20 + $0x8] sm:$0xff] }
 0x2ba   : > { %v1032_v46 = vpop.permute.xlu1 %1031 }
 0x2be   : > { %v1029_v47 = vpop.permute.xlu1 %1028 }
 0x2c2   : > { %v1204_v48 = vpop.permute.xlu1 %1203 }
 0x2c6   : > { %v1382_v51 = vpop.permute.xlu1 %1381 }
 0x2ca   : > { %v1379_v53 = vpop.permute.xlu1 %1378 }
 0x31e   : > { %v937_v38 = vpop.f32.mrb[2].mxu1 }
 0x31f   : > { %v1979_v39 = vpop.f32.mrb[3].mxu1  ;;  %v941_v40 = vsel %vm864_vm2, %v937_v38, -inf }
 0x320   : > { %942 = vmax.xlane.f32.xlu0 %v941_v40 }
 0x3ad   : > { %v943_v41 = vpop.xlane.xlu0 %942 }
 0x3ae   : > { %v944_v42 = vsub.f32 %v937_v38, %v943_v41 }
 0x3b0   : > { %v945_v43 = vmul.f32 1.442695, %v944_v42 }
 0x3b2   : > { %2214 = vpow2.f32 %v945_v43 }
 0x3bc   : > { %v2215_v44 = vpop.eup %2214 }
 0x3bd   : > { %v947_v45 = vsel %vm864_vm2, %v2215_v44, 0.0 }
 0x3be   : > { %948 = vadd.xlane.f32.xlu0 %v947_v45  ;;  %v1900_v45 = vld [vmem:[#allocation22] ss:$0 sm:$0xff] }
 0x3d4   : > { %1206 = vrot.lane.b32.xlu0 %v1026_v31, %s2665_s15  ;;  %v1552_v31 = vld [vmem:[#allocation20] sm:$0xff] }
 0x3d5   : > { %v2045_v33 = vpack.c.bf16 %v1553_v32, %v1552_v31 }
 0x44b   : > { %v949_v49 = vpop.xlane.xlu0 %948 }
 0x44c   : > { %2216 = vrcp.f32 %v949_v49 }
 0x44f   : > { %v1207_v50 = vpop.permute.xlu0 %1206 }
 0x450   : > { %1996 = vmatpush3.xpose.msk.msra.mxu0 %vm864_vm2, %v1207_v50 }
 0x451   : > { %2005 = vmatprep.subr.mxu0 %v2663_v1 }
 0x453   : > { %1998 = vmatmul.mubr.msk.f32.vlgmr.msra.gmra.mrb[4].mxu0 %vm864_vm2, %v1204_v48 }
 0x454   : > { %2006 = vmatpush3.xpose.msk.msra.mxu0 %vm864_vm2, %v1382_v51  ;;  %2007 = vmatprep.mubr.msk.f32.mxu0 %vm2662_vm0, %v2663_v1 }
 0x455   : > { %2044 = vmatprep.subr.bf16.mxu0 %v2661_v0 }
 0x456   : > { %v2217_v52 = vpop.eup %2216 }
 0x457   : > { %v951_v54 = vmul.f32 %v2217_v52, %v2215_v44  ;;  %2008 = vmatmul.mubr.msk.f32.vlgmr.msra.gmra.mrb[6].mxu0 %vm864_vm2, %v1379_v53 }
 0x458   : > { %2023 = vmatprep.mubr.msk.f32.mxu0 %vm2662_vm0, %v2663_v1  ;;  %2046 = vmatpush3.bf16.msra.mxu0 %v2045_v33 }
 0x459   : > { %1983 = vmatmul.mubr.msk.f32.vlgmr.msra.gmra.mrb[4].mxu1 %vm864_vm2, %v951_v54  ;;  %2047 = vmatprep.subr.bf16.mxu0 %v2661_v0 }
 0x45a   : > { %1986 = vmatpush3.xpose.msk.msra.mxu1 %vm864_vm2, %v1032_v46  ;;  %1987 = vmatprep.mubr.msk.f32.mxu1 %vm2662_vm0, %v2663_v1 }
 0x45b   : > { %1990 = vmatprep.subr.mxu1 %v2663_v1 }
 0x45c   : > { %2049 = vmatpush3.bf16.msra.mxu0 %v2048_v36 }
 0x45d   : > { %1988 = vmatmul.mubr.msk.f32.vlgmr.msra.gmra.mrb[6].mxu1 %vm864_vm2, %v1029_v47 }
 0x45e   : > { %1992 = vmatprep.mubr.msk.f32.mxu1 %vm2662_vm0, %v2663_v1 }
 0x526   : > { %v1278_v55 = vpop.f32.mrb[4].mxu0 }
 0x527   : > { %v1999_v56 = vpop.f32.mrb[5].mxu0  ;;  %v1282_v57 = vsel %vm864_vm2, %v1278_v55, -inf }
 0x528   : > { %1283 = vmax.xlane.f32.xlu0 %v1282_v57 }
 0x52a   : > { %v1453_v58 = vpop.f32.mrb[6].mxu0 }
 0x52b   : > { %v2009_v59 = vpop.f32.mrb[7].mxu0  ;;  %v1457_v3 = vsel %vm864_vm2, %v1453_v58, -inf }
 0x52c   : > { %v1021_v60 = vpop.f32.mrb[4].mxu1 }
 0x52d   : > { %1025 = vst.msk [vmem:[#allocation4] sm:$0xff] %vm864_vm2, %v1021_v60  ;;  %v1984_v61 = vpop.f32.mrb[5].mxu1 }
 0x530   : > { %v1103_v62 = vpop.f32.mrb[6].mxu1 }
 0x531   : > { %v1989_v63 = vpop.f32.mrb[7].mxu1  ;;  %v1107_v2 = vsel %vm864_vm2, %v1103_v62, -inf }
 0x532   : > { %1108 = vmax.xlane.f32.xlu1 %v1107_v2 }
 0x536   : > { %1458 = vmax.xlane.f32.xlu1 %v1457_v3 }
 0x5b5   : > { %v1284_v4 = vpop.xlane.xlu0 %1283 }
 0x5b6   : > { %v1285_v5 = vsub.f32 %v1278_v55, %v1284_v4 }
 0x5b8   : > { %v1286_v6 = vmul.f32 1.442695, %v1285_v5 }
 0x5ba   : > { %2218 = vpow2.f32 %v1286_v6 }
 0x5bf   : > { %v1109_v7 = vpop.xlane.xlu1 %1108 }
 0x5c0   : > { %v1110_v15 = vsub.f32 %v1103_v62, %v1109_v7 }
 0x5c2   : > { %v1111_v16 = vmul.f32 1.442695, %v1110_v15 }
 0x5c3   : > { %v1459_v8 = vpop.xlane.xlu1 %1458 }
 0x5c4   : > { %v2219_v9 = vpop.eup %2218  ;;  %v1460_v10 = vsub.f32 %v1453_v58, %v1459_v8 }
 0x5c5   : > { %v1288_v11 = vsel %vm864_vm2, %v2219_v9, 0.0 }
 0x5c6   : > { %v1461_v12 = vmul.f32 1.442695, %v1460_v10  ;;  %1289 = vadd.xlane.f32.xlu0 %v1288_v11 }
 0x5c8   : > { %2220 = vpow2.f32 %v1461_v12 }
 0x5c9   : > { %2222 = vpow2.f32 %v1111_v16 }
 0x5d2   : > { %v2221_v13 = vpop.eup %2220 }
 0x5d3   : > { %v1463_v14 = vsel %vm864_vm2, %v2221_v13, 0.0  ;;  %v2223_v17 = vpop.eup %2222 }
 0x5d4   : > { %1464 = vadd.xlane.f32.xlu1 %v1463_v14  ;;  %v1113_v18 = vsel %vm864_vm2, %v2223_v17, 0.0 }
 0x5dc   : > { %1119 = vrot.lane.b32.xlu0 %v3181_v37, %s2664_s23  ;;  %s2550_s23 = scalar_lea.vmem %s2549_s14, 256 }
 0x5dd   : > { %p2552_p6 = scmp.lt.s32.totalorder %s2550_s23, %s2544_s21 }
 0x5df   : > { %p2553_p7 = por %p2552_p6, %p2551_p0 }
 0x5e1   : > { %p2554_p11 = pnand %p2553_p7, %p2547_p5 }
 0x5e5   : > { %1294 = vrot.lane.b32.xlu1 %v3181_v37, %s2665_s15 }
 0x609   : > { %1114 = vadd.xlane.f32.xlu1 %v1113_v18 }
 0x61a   : > { %1469 = vrot.lane.b32.xlu1 %v3181_v37, %s2666_s11 }
 0x653   : > { %v1290_v19 = vpop.xlane.xlu0 %1289 }
 0x657   : > { %v1120_v20 = vpop.permute.xlu0 %1119 }
 0x658   : > { %1991 = vmatpush3.msra.mxu1 %v1120_v20 }
 0x659   : > { %2000 = vmatprep.subr.mxu1 %v2663_v1 }
 0x661   : > { %v1465_v21 = vpop.xlane.xlu1 %1464 }
 0x665   : > { %v1295_v22 = vpop.permute.xlu1 %1294 }
 0x696   : > { %v1115_v23 = vpop.xlane.xlu1 %1114 }
 0x697   : > { %2224 = vrcp.f32 %v1115_v23 }
 0x698   : > { %2226 = vrcp.f32 %v1290_v19 }
 0x699   : > { %2228 = vrcp.f32 %v1465_v21 }
 0x69a   : > { %v1470_v29 = vpop.permute.xlu1 %1469 }
 0x6a1   : > { %v2225_v24 = vpop.eup %2224 }
 0x6a2   : > { %v1117_v25 = vmul.f32 %v2225_v24, %v2223_v17  ;;  %v2227_v26 = vpop.eup %2226 }
 0x6a3   : > { %v1292_v27 = vmul.f32 %v2227_v26, %v2219_v9  ;;  %v2229_v28 = vpop.eup %2228 }
 0x6a4   : > { %1993 = vmatmul.mubr.msk.f32.vlgmr.msra.gmra.mrb[8].mxu1 %vm864_vm2, %v1117_v25  ;;  %v1467_v30 = vmul.f32 %v2229_v28, %v2221_v13 }
 0x6a5   : > { %2001 = vmatpush3.msra.mxu1 %v1295_v22  ;;  %2002 = vmatprep.mubr.msk.f32.mxu1 %vm2662_vm0, %v2663_v1 }
 0x6a6   : > { %2010 = vmatprep.subr.mxu1 %v2663_v1 }
 0x6a8   : > { %2003 = vmatmul.mubr.msk.f32.vlgmr.msra.gmra.mrb[10].mxu1 %vm864_vm2, %v1292_v27 }
 0x6a9   : > { %2011 = vmatpush3.msra.mxu1 %v1470_v29  ;;  %2012 = vmatprep.mubr.msk.f32.mxu1 %vm2662_vm0, %v2663_v1 }
 0x6ac   : > { %2013 = vmatmul.mubr.msk.f32.vlgmr.msra.gmra.mrb[12].mxu1 %vm864_vm2, %v1467_v30 }
 0x777   : > { %v1191_v37 = vpop.f32.mrb[8].mxu1 }
 0x778   : > { %1196 = vrot.lane.b32.xlu0 %v1191_v37, %s2667_s28  ;;  %v1994_v38 = vpop.f32.mrb[9].mxu1 }
 0x77b   : > { %v1366_v39 = vpop.f32.mrb[10].mxu1 }
 0x77c   : > { %1371 = vrot.lane.b32.xlu1 %v1366_v39, %s2668_s0  ;;  %v2004_v1 = vpop.f32.mrb[11].mxu1 }
 0x77f   : > { %v1541_v40 = vpop.f32.mrb[12].mxu1 }
 0x780   : > { %1546 = vrot.lane.b32.xlu0 %v1541_v40, %s2669_s24  ;;  %v2014_v41 = vpop.f32.mrb[13].mxu1 }
 0x7ea   : > { %v1197_v42 = vpop.permute.xlu0 %1196 }
 0x7eb   : > { %1200 = vst.msk [vmem:[#allocation4] sm:$0xff] %vm1199_vm3, %v1197_v42 }
 0x7ee   : > { %v1372_v0 = vpop.permute.xlu1 %1371 }
 0x7ef   : > { %1375 = vst.msk [vmem:[#allocation4] sm:$0xff] %vm1374_vm4, %v1372_v0 }
 0x7f2   : > { %v1547_v43 = vpop.permute.xlu0 %1546 }
 0x7f3   : > { %1550 = vst.msk [vmem:[#allocation4] sm:$0xff] %vm1549_vm5, %v1547_v43 }
 0x7fa   : > { %v1551_v44 = vld [vmem:[#allocation4] sm:$0xff] }
 0x7fb   : > { %2024 = vmatmul.mubr.msk.f32.vlgmr.msra.gmra.mrb[8].mxu0 %vm614_vm1, %v1551_v44 }
 0x8ce   : > { %v1632_v46 = vpop.f32.mrb[8].mxu0 }
 0x8cf   : > { %v1633_v47 = vadd.f32 %v1900_v45, %v1632_v46  ;;  %v2025_v48 = vpop.f32.mrb[9].mxu0 }
 0x8d1   : > { %1636 = vst.msk [vmem:[%s597_s16] sm:$0xff] %vm614_vm1, %v1633_v47 }
 0x8d2   : > { %2557 = shalt.err (!%p2554_p11)
}
 0x8d3   : > { %s2558_s7 = scalar_lea.hbm %s3235_s29, 128  ;;  %s2562_s28 = scalar_lea.hbm %s3368_s5, 256 }
 0x8d4   : > { %p2559_p13 = scmp.ne.s32.totalorder %s3235_s29, %s2558_s7  ;;  %p2563_p8 = scmp.lt.u32.totalorder %s3235_s29, %s3368_s5 }
 0x8d5   : > { %p2564_p12 = scmp.lt.u32.totalorder %s2562_s28, %s2558_s7  ;;  %p2566_p10 = scmp.lt.u32.totalorder %s2558_s7, %s3235_s29 }
 0x8d6   : > { %p2560_p2 = pnand %p2559_p13, %p3369_p3 }
 0x8d7   : > { %p2565_p9 = por %p2564_p12, %p2563_p8 }
 0x8d8   : > { %p2561_p4 = pneg %p2560_p2 }
 0x8d9   : > { %p2567_p1 = por %p2566_p10, %p2565_p9 }
 0x8db   : > { %p2568_p5 = pnand %p2567_p1, %p2561_p4 }
 0x8dd   : > { %2571 = shalt.err (!%p2568_p5)
}
 0x8de   : > { %2088 = dma.vmem_to_hbm [thread:$0]  (%p3369_p3), %s3237_s27, 128, %s3235_s29, %s1638_s25  }
 0x8df PF: > { %s3370_s24 = sld [smem:[#allocation33_spill]]  ;;  %s1664_s12 = sand.u32 1, %s2626_s17  }
 0x8e0   : > { %p3371_p0 = scmp.ne.s32.totalorder %s3343_s30, 0  ;;  %s1665_s16 = scalar_lea.sflag [#allocation7], %s1664_s12 }
 0x8e5   : > { %p3372_p6 = scmp.ge.s32.totalorder %s3370_s24, 2 }
 0x8e7   : > { %p2126_p7 = pnand %p3372_p6, %p3371_p0 }
 0x8e9   : > { %2621 = dma.done.wait (!%p2126_p7), %s1665_s16, 128  }
 0x8ea   : > { %2623 = vsyncadd (!%p2126_p7), %s1665_s16, 4294967168  ;;  %s34_s22 = sadd.s32 1, %s3370_s24   ;;  %s3373_s20 = sld [smem:[#allocation36_spill]] }
 0x8eb   : > { %p31_p11 = scmp.ge.s32.totalorder %s34_s22, 4   ;;  %s3374_s3 = sld [smem:[#allocation32_spill]] }
 0x8ec   : > { %s3375_s21 = sld [smem:[#allocation35_spill]]  ;;  %s3376_s17 = smov %s2630_s18 }
 0x8ed   : > { %s3377_s18 = smov %s2634_s19  ;;  %33 = sbr.rel (!%p31_p11) target bundleno = 21 (0x15), region = 169 }
 0x8f0   : > { %s3378_s19 = smov %s3373_s20 }
 0x8f1   : > { %s3379_s20 = smov %s3374_s3 }
 0x8f4   :  { %1670 = vsyncpa [#allocation6], 1 }
 0x8f5   :  { %1672 = vsyncpa [#allocation6 + $0x1], 1 }
 0x8f6   :  { %1673 = vsyncpa [#allocation9], 1 }
 0x8f7   :  { %1675 = vsyncpa [#allocation9 + $0x1], 1 }
 0x8f8   :  { %1676 = vsyncpa [#allocation12], 1 }
 0x8f9   :  { %1677 = vsyncpa [#allocation15], 1 }
 0x8fa   :  { %1678 = vsyncpa [#allocation18], 1 }
 0x8fb   :  { %1679 = vsyncpa [#allocation21], 1 }
 0x8fc   :  { %1680 = vsyncpa [#allocation7], 1 }
 0x8fd   :  { %1682 = vsyncpa [#allocation7 + $0x1], 1 }

// kernel: tpu_custom_call.1
= control target key start
LH: loop header
LB: loop body
LE: loop exit
PB: predicated region body
PF: predicated region fallthrough
CT: control target
= control target key end

     0   :  { %s3285_s0 = inlined_call_operand.hbm [shape: f32[2,8,32], index: 0, kind: input, shape index: {}]   ;;  %s3286_s1 = inlined_call_operand.hbm [shape: f32[2,8,32], index: 1, kind: input, shape index: {}]   ;;  %s3287_s2 = inlined_call_operand.hbm [shape: f32[2,8,32], index: 2, kind: input, shape index: {}]   ;;  %s3288_s3 = inlined_call_operand.hbm [shape: f32[32,32], index: 3, kind: input, shape index: {}]   ;;  %s3289_s4 = inlined_call_operand.hbm [shape: f32[1,32], index: 4, kind: input, shape index: {}]   ;;  %s3290_s5 = inlined_call_operand.hbm [shape: f32[32,32], index: 5, kind: input, shape index: {}]   ;;  %s3291_s6 = inlined_call_operand.hbm [shape: f32[1,32], index: 6, kind: input, shape index: {}]   ;;  %s3292_s7 = inlined_call_operand.hbm [shape: f32[32,32], index: 7, kind: input, shape index: {}]   ;;  %s3293_s8 = inlined_call_operand.hbm [shape: f32[1,32], index: 8, kind: input, shape index: {}]   ;;  %s3294_s9 = inlined_call_operand.hbm [shape: f32[32,32], index: 9, kind: input, shape index: {}]   ;;  %s3295_s10 = inlined_call_operand.hbm [shape: f32[1,32], index: 10, kind: input, shape index: {}]   ;;  %s3296_s11 = inlined_call_operand.hbm [shape: f32[2,8,32], index: 11, kind: output, shape index: {}]  }
   0x1   :  { %3318 = sst [smem:[#allocation37_spill]] %s3285_s0 }
   0x2   :  { %3319 = sst [smem:[#allocation38_spill]] %s3286_s1 }
   0x3   :  { %3320 = sst [smem:[#allocation39_spill]] %s3287_s2 }
   0x4   :  { %3321 = sst [smem:[#allocation40_spill]] %s3288_s3 }
   0x5   :  { %3322 = sst [smem:[#allocation41_spill]] %s3290_s5 }
   0x6   :  { %3323 = sst [smem:[#allocation42_spill]] %s3292_s7 }
   0x7   :  { %3324 = sst [smem:[#allocation43_spill]] %s3294_s9 }
   0x8   :  { %3325 = sst [smem:[#allocation44_spill]] %s3296_s11 }
   0x9   :  { %16 = vsyncpa [#allocation6], 0 }
   0xa   :  { %18 = vsyncpa [#allocation6 + $0x1], 0 }
   0xb   :  { %19 = vsyncpa [#allocation9], 0 }
   0xc   :  { %21 = vsyncpa [#allocation9 + $0x1], 0 }
   0xd   :  { %22 = vsyncpa [#allocation12], 0 }
   0xe   :  { %23 = vsyncpa [#allocation15], 0 }
   0xf   :  { %24 = vsyncpa [#allocation18], 0 }
  0x10   :  { %25 = vsyncpa [#allocation21], 0 }
  0x11   :  { %26 = vsyncpa [#allocation7], 0 }
  0x12   :  { %28 = vsyncpa [#allocation7 + $0x1], 0  ;;  %s2731_s17 = smov 0   ;;  %s2733_s18 = smov 0  }
  0x13   :  { %s2735_s19 = smov 0   ;;  %s2737_s20 = smov 0  }
  0x14   :  { %s2739_s21 = smov 0   ;;  %s2741_s22 = smov 0  }
  0x15 LB: > { %3326 = sst [smem:[#allocation31_spill]] %s2638_s20  ;;  %s2762_s23 = sadd.s32 4294967295, %s2646_s22   ;;  %s2646_s22 = sphi %s2741_s22, %s34_s22   ;;  %s2642_s21 = sphi %s2739_s21, %s3375_s21   ;;  %s2638_s20 = sphi %s2737_s20, %s3379_s20   ;;  %s2634_s19 = sphi %s2735_s19, %s3378_s19   ;;  %s2630_s18 = sphi %s2733_s18, %s3377_s18   ;;  %s2626_s17 = sphi %s2731_s17, %s3376_s17  }
  0x16   : > { %3327 = sst [smem:[#allocation32_spill]] %s2642_s21  ;;  %p1853_p0 = scmp.ge.s32.totalorder %s2646_s22, 1 }
  0x17   : > { %3328 = sst [smem:[#allocation33_spill]] %s2646_s22  ;;  %p3301_p1 = scmp.eq.s32.totalorder %s2762_s23, 0 }
  0x18   : > { %p327_p2 = scmp.lt.s32.totalorder %s2646_s22, 3  ;;  %s2648_s25 = smov [#allocation11]  }
  0x19   : > { %s339_s26 = sshll.u32 %s2648_s25, 4  ;;  %s2649_s28 = smov [#allocation14]   ;;  %s2771_s26 = int_to_ptr.vmem [resolvable:$true] %s339_s26 }
  0x1a   : > { %p2767_p3 = pnand %p1853_p0, %p327_p2  ;;  %s363_s29 = sshll.u32 %s2649_s28, 4  ;;  %s2782_s29 = int_to_ptr.vmem [resolvable:$true] %s363_s29 }
  0x1b   : > { %s2650_s30 = smov [#allocation17]   ;;  %s3332_s3 = sld [smem:[#allocation40_spill]] }
  0x1c   : > { %s3329_s24 = scalar_select %p2767_p3, 1, 0 }
  0x1d   : > { %p2090_p4 = pneg %p2767_p3  ;;  %s2784_s12 = sshll.u32 %s2650_s30, 4  ;;  %s388_s12 = int_to_ptr.vmem [resolvable:$true] %s2784_s12 }
  0x1e   : > { %3330 = sst [smem:[#allocation34_spill]] %s3329_s24 }
  0x1f   : > { %p2778_p6 = pnand %p2090_p4, %p3301_p1 }
  0x21   : > { %s3331_s27 = scalar_select %p2778_p6, 1, 0 }
  0x22   : > { %s2230_s15 = scalar_lea.hbm %s3332_s3, 512  ;;  %p2794_p8 = pneg %p2778_p6 }
  0x23   : > { %p2231_p7 = scmp.ne.s32.totalorder %s3332_s3, %s2230_s15  ;;  %p2237_p11 = scmp.lt.u32.totalorder %s2230_s15, %s3332_s3 }
  0x24   : > { %s3333_s11 = scalar_select %p2794_p8, 1, 0 }
  0x25   : > { %p2233_p9 = pnand %p2794_p8, %p2231_p7 }
  0x27   : > { %p2234_p10 = pneg %p2233_p9 }
  0x29   : > { %p2239_p12 = pnand %p2237_p11, %p2234_p10 }
  0x2b   : > { %2242 = shalt.err (!%p2239_p12)
}
  0x2c   : > { %s2243_s13 = scalar_lea.vmem %s2771_s26, 512  ;;  %p2251_p4 = scmp.lt.s32.totalorder %s2771_s26, %s2771_s26 }
  0x2d   : > { %p2244_p13 = scmp.ne.s32.totalorder %s2771_s26, %s2243_s13  ;;  %p2252_p5 = scmp.lt.s32.totalorder %s2243_s13, %s2243_s13 }
  0x2f   : > { %p2246_p0 = pnand %p2244_p13, %p2794_p8  ;;  %p2253_p7 = por %p2252_p5, %p2251_p4 }
  0x31   : > { %p2247_p2 = pneg %p2246_p0 }
  0x33   : > { %p2254_p9 = pnand %p2253_p7, %p2247_p2 }
  0x35   : > { %2257 = shalt.err (!%p2254_p9)
}
  0x36   : > { %s2651_s14 = smov 128   ;;  %s2652_s15 = smov 8  }
  0x37   : > { %2093 = dma.hbm_to_vmem [thread:$0]  (!%p2778_p6), %s3332_s3, 512, %s2771_s26, [#allocation12], %s2651_s14, %s2651_s14, %s2652_s15  }
  0x38   : > { %s3334_s5 = sld [smem:[#allocation41_spill]] }
  0x3e   : > { %s2258_s13 = scalar_lea.hbm %s3334_s5, 512 }
  0x3f   : > { %p2259_p5 = scmp.ne.s32.totalorder %s3334_s5, %s2258_s13  ;;  %p2265_p12 = scmp.lt.u32.totalorder %s2258_s13, %s3334_s5 }
  0x41   : > { %p2261_p10 = pnand %p2259_p5, %p2794_p8 }
  0x43   : > { %p2262_p11 = pneg %p2261_p10 }
  0x45   : > { %p2267_p13 = pnand %p2265_p12, %p2262_p11 }
  0x47   : > { %2270 = shalt.err (!%p2267_p13)
}
  0x48   : > { %s2271_s26 = scalar_lea.vmem %s2782_s29, 512  ;;  %p2279_p7 = scmp.lt.s32.totalorder %s2782_s29, %s2782_s29 }
  0x49   : > { %p2272_p0 = scmp.ne.s32.totalorder %s2782_s29, %s2271_s26  ;;  %p2280_p9 = scmp.lt.s32.totalorder %s2271_s26, %s2271_s26 }
  0x4b   : > { %p2274_p2 = pnand %p2272_p0, %p2794_p8  ;;  %p2281_p5 = por %p2280_p9, %p2279_p7 }
  0x4d   : > { %p2275_p4 = pneg %p2274_p2 }
  0x4f   : > { %p2282_p10 = pnand %p2281_p5, %p2275_p4 }
  0x51   : > { %2285 = shalt.err (!%p2282_p10)
}
  0x52   : > { %2099 = dma.hbm_to_vmem [thread:$0]  (!%p2778_p6), %s3334_s5, 512, %s2782_s29, [#allocation15], %s2651_s14, %s2651_s14, %s2652_s15  }
  0x53   : > { %s3335_s7 = sld [smem:[#allocation42_spill]] }
  0x59   : > { %s2286_s16 = scalar_lea.hbm %s3335_s7, 512 }
  0x5a   : > { %p2287_p11 = scmp.ne.s32.totalorder %s3335_s7, %s2286_s16  ;;  %p2293_p0 = scmp.lt.u32.totalorder %s2286_s16, %s3335_s7 }
  0x5c   : > { %p2289_p12 = pnand %p2287_p11, %p2794_p8 }
  0x5e   : > { %p2290_p13 = pneg %p2289_p12 }
  0x60   : > { %p2295_p2 = pnand %p2293_p0, %p2290_p13 }
  0x62   : > { %2298 = shalt.err (!%p2295_p2)
}
  0x63   : > { %s2299_s26 = scalar_lea.vmem %s388_s12, 512  ;;  %p2307_p5 = scmp.lt.s32.totalorder %s388_s12, %s388_s12 }
  0x64   : > { %p2300_p4 = scmp.ne.s32.totalorder %s388_s12, %s2299_s26  ;;  %p2308_p10 = scmp.lt.s32.totalorder %s2299_s26, %s2299_s26 }
  0x66   : > { %p2302_p7 = pnand %p2300_p4, %p2794_p8  ;;  %p2309_p1 = por %p2308_p10, %p2307_p5 }
  0x68   : > { %p2303_p9 = pneg %p2302_p7 }
  0x6a   : > { %p2310_p3 = pnand %p2309_p1, %p2303_p9 }
  0x6c   : > { %2313 = shalt.err (!%p2310_p3)
}
  0x6d   : > { %2105 = dma.hbm_to_vmem [thread:$0]  (!%p2778_p6), %s3335_s7, 512, %s388_s12, [#allocation18], %s2651_s14, %s2651_s14, %s2652_s15  }
  0x6e   : > { %s2653_s2 = smov [#allocation20]   ;;  %s3336_s9 = sld [smem:[#allocation43_spill]] }
  0x6f   : > { %s411_s20 = sshll.u32 %s2653_s2, 4  ;;  %s412_s20 = int_to_ptr.vmem [resolvable:$true] %s411_s20 }
  0x74   : > { %s2314_s25 = scalar_lea.hbm %s3336_s9, 512 }
  0x75   : > { %p2315_p1 = scmp.ne.s32.totalorder %s3336_s9, %s2314_s25  ;;  %p2321_p12 = scmp.lt.u32.totalorder %s2314_s25, %s3336_s9 }
  0x77   : > { %p2317_p3 = pnand %p2315_p1, %p2794_p8 }
  0x79   : > { %p2318_p11 = pneg %p2317_p3 }
  0x7b   : > { %p2323_p13 = pnand %p2321_p12, %p2318_p11 }
  0x7d   : > { %2326 = shalt.err (!%p2323_p13)
}
  0x7e   : > { %s2327_s12 = scalar_lea.vmem %s412_s20, 512  ;;  %p2335_p7 = scmp.lt.s32.totalorder %s412_s20, %s412_s20 }
  0x7f   : > { %p2328_p0 = scmp.ne.s32.totalorder %s412_s20, %s2327_s12  ;;  %p2336_p9 = scmp.lt.s32.totalorder %s2327_s12, %s2327_s12 }
  0x81   : > { %p2330_p2 = pnand %p2328_p0, %p2794_p8  ;;  %p2337_p5 = por %p2336_p9, %p2335_p7 }
  0x83   : > { %p2331_p4 = pneg %p2330_p2 }
  0x85   : > { %p2338_p10 = pnand %p2337_p5, %p2331_p4 }
  0x87   : > { %2341 = shalt.err (!%p2338_p10)
}
  0x88   : > { %2111 = dma.hbm_to_vmem [thread:$0]  (!%p2778_p6), %s3336_s9, 512, %s412_s20, [#allocation21], %s2651_s14, %s2651_s14, %s2652_s15  }
  0x89   : > { %s1852_s2 = sadd.s32 4294967294, %s2646_s22   ;;  %s46_s24 = sadd.s32 1, %s2642_s21 }
  0x8a   : > { %p48_p1 = scmp.ge.s32.totalorder %s46_s24, 2  ;;  %s55_s16 = sadd.s32 1, %s2634_s19 }
  0x8b   : > { %p62_p3 = scmp.ne.s32.totalorder %s2634_s19, %s2630_s18  ;;  %p63_p11 = scmp.eq.s32.totalorder %s2646_s22, 0 }
  0x8c   : > { %s3381_s24 = smov (%p48_p1, %s46_s24), 0  ;;  %p68_p13 = scmp.ne.s32.totalorder %s2630_s18, %s2626_s17 }
  0x8d   : > { %3337 = sst [smem:[#allocation35_spill]] %s3381_s24  ;;  %p2895_p12 = por %p63_p11, %p62_p3 }
  0x8e   : > { %s50_s14 = ssub.s32 %s2642_s21, %s3381_s24  ;;  %p314_p0 = scmp.eq.s32.totalorder %s2762_s23, 1 }
  0x8f   : > { %p53_p2 = scmp.eq.s32.totalorder %s50_s14, 0  ;;  %p3339_p4 = scmp.eq.s32.totalorder %s2762_s23, 0 }
  0x90   : > { %p2910_p9 = por %p314_p0, %p62_p3  ;;  %p320_p5 = scmp.eq.s32.totalorder %s1852_s2, 1 }
  0x91   : > { %p2906_p7 = por %p3339_p4, %p68_p13  ;;  %p2137_p1 = scmp.lt.s32.totalorder %s2646_s22, 2 }
  0x92   : > { %s3341_s20 = scalar_select %p2910_p9, 1, 0 }
  0x93   : > { %s3340_s15 = scalar_select %p2906_p7, 1, 0 }
  0x94   : > { %s2915_s28 = scalar_select %p53_p2, %s2634_s19, %s55_s16  }
  0x95   : > { %p2917_p10 = por %p320_p5, %p68_p13  ;;  %s3303_s13 = sand.u32 1, %s2634_s19  }
  0x96   : > { %3342 = sst [smem:[#allocation36_spill]] %s2915_s28  ;;  %s2924_s26 = sshll.u32 %s2642_s21, 7 }
  0x97   : > { %s3343_s30 = scalar_select %p2917_p10, 1, 0 }
  0x98   : > { %s2928_s12 = sshll.u32 %s3303_s13, 3  ;;  %p2932_p3 = pnand %p2137_p1, %p2895_p12 }
  0x99   : > { %s455_s0 = sand.u32 1, %s2646_s22   ;;  %s3345_s1 = sld [smem:[#allocation38_spill]] }
  0x9a   : > { %s3344_s29 = scalar_select %p2932_p3, 1, 0 }
  0x9b   : > { %s459_s3 = scalar_lea.vmem [#allocation8], %s2928_s12  ;;  %s2946_s25 = scalar_lea.sflag [#allocation9], %s455_s0 }
  0x9c   : > { %s466_s13 = sshll.u32 %s459_s3, 4  ;;  %p2952_p12 = pneg %p2932_p3  ;;  %s2944_s13 = int_to_ptr.vmem [resolvable:$true] %s466_s13 }
  0x9e   : > { %s3346_s7 = scalar_select %p2952_p12, 1, 0 }
  0x9f   : > { %s2941_s14 = scalar_lea.hbm %s3345_s1, %s2924_s26  ;;  %s2347_s9 = scalar_lea.hbm %s3345_s1, 256 }
  0xa0   : > { %s2342_s5 = scalar_lea.hbm %s2941_s14, 128  ;;  %p2348_p2 = scmp.lt.u32.totalorder %s2941_s14, %s3345_s1 }
  0xa1   : > { %p2343_p11 = scmp.ne.s32.totalorder %s2941_s14, %s2342_s5  ;;  %p2349_p4 = scmp.lt.u32.totalorder %s2347_s9, %s2342_s5 }
  0xa2   : > { %p2351_p1 = scmp.lt.u32.totalorder %s2342_s5, %s2941_s14 }
  0xa3   : > { %p2345_p13 = pnand %p2952_p12, %p2343_p11  ;;  %p2350_p5 = por %p2349_p4, %p2348_p2 }
  0xa5   : > { %p2346_p0 = pneg %p2345_p13  ;;  %p2352_p10 = por %p2351_p1, %p2350_p5 }
  0xa7   : > { %p2353_p9 = pnand %p2352_p10, %p2346_p0 }
  0xa9   : > { %2356 = shalt.err (!%p2353_p9)
}
  0xaa   : > { %s2357_s0 = scalar_lea.vmem %s2944_s13, 128  ;;  %s2654_s2 = smov [#allocation8]  }
  0xab   : > { %p2358_p11 = scmp.ne.s32.totalorder %s2944_s13, %s2357_s0  ;;  %s2362_s16 = sshll.u32 %s2654_s2, 4  ;;  %s2363_s16 = int_to_ptr.vmem [resolvable:$false] %s2362_s16 }
  0xac   : > { %s2364_s24 = scalar_lea.vmem %s2363_s16, 256  ;;  %p2365_p6 = scmp.lt.s32.totalorder %s2944_s13, %s2363_s16 }
  0xad   : > { %p2360_p13 = pnand %p2358_p11, %p2952_p12  ;;  %p2366_p8 = scmp.lt.s32.totalorder %s2364_s24, %s2357_s0 }
  0xaf   : > { %p2361_p7 = pneg %p2360_p13  ;;  %p2367_p2 = por %p2366_p8, %p2365_p6 }
  0xb1   : > { %p2368_p4 = pnand %p2367_p2, %p2361_p7 }
  0xb3   : > { %2371 = shalt.err (!%p2368_p4)
}
  0xb4   : > { %2121 = dma.hbm_to_vmem [thread:$0]  (!%p2932_p3), %s2941_s14, 128, %s2944_s13, %s2946_s25  }
  0xb5   : > { %s2655_s5 = smov [#allocation13]   ;;  %s2656_s3 = smov [#allocation16]  }
  0xb6   : > { %s353_s9 = sshll.u32 %s2655_s5, 4  ;;  %s377_s1 = sshll.u32 %s2656_s3, 4  ;;  %s354_s9 = int_to_ptr.vmem [resolvable:$true] %s353_s9  ;;  %s378_s1 = int_to_ptr.vmem [resolvable:$true] %s377_s1 }
  0xb7   : > { %s2372_s16 = scalar_lea.hbm %s3289_s4, 16  ;;  %p3347_p8 = scmp.ne.s32.totalorder %s3333_s11, 0 }
  0xb8   : > { %p2373_p6 = scmp.ne.s32.totalorder %s3289_s4, %s2372_s16  ;;  %p2379_p10 = scmp.lt.u32.totalorder %s2372_s16, %s3289_s4 }
  0xba   : > { %p2375_p7 = pnand %p2373_p6, %p3347_p8 }
  0xbc   : > { %p2376_p9 = pneg %p2375_p7 }
  0xbe   : > { %p2381_p0 = pnand %p2379_p10, %p2376_p9 }
  0xc0   : > { %2384 = shalt.err (!%p2381_p0)
}
  0xc1   : > { %s2385_s13 = scalar_lea.vmem %s354_s9, 16  ;;  %s2392_s21 = scalar_lea.vmem %s354_s9, 32 }
  0xc2   : > { %p2386_p5 = scmp.ne.s32.totalorder %s354_s9, %s2385_s13  ;;  %p2393_p13 = scmp.lt.s32.totalorder %s354_s9, %s354_s9 }
  0xc3   : > { %p2394_p2 = scmp.lt.s32.totalorder %s2392_s21, %s2385_s13 }
  0xc4   : > { %p2388_p1 = pnand %p2386_p5, %p3347_p8 }
  0xc5   : > { %p2395_p4 = por %p2394_p2, %p2393_p13 }
  0xc6   : > { %p2389_p11 = pneg %p2388_p1 }
  0xc8   : > { %p2396_p3 = pnand %p2395_p4, %p2389_p11 }
  0xca   : > { %2399 = shalt.err (!%p2396_p3)
}
  0xcb   : > { %p3348_p6 = scmp.ne.s32.totalorder %s3331_s27, 0  ;;  %s2400_s3 = scalar_lea.hbm %s3291_s6, 16 }
  0xcc   : > { %p2401_p7 = scmp.ne.s32.totalorder %s3291_s6, %s2400_s3  ;;  %p2407_p3 = scmp.lt.u32.totalorder %s2400_s3, %s3291_s6 }
  0xcd   : > { %2096 = dma.hbm_to_vmem [thread:$0]  (!%p3348_p6), %s3289_s4, 16, %s354_s9, [#allocation12]  }
  0xce   : > { %p2403_p9 = pnand %p2401_p7, %p3347_p8 }
  0xd0   : > { %p2404_p10 = pneg %p2403_p9 }
  0xd2   : > { %p2409_p0 = pnand %p2407_p3, %p2404_p10 }
  0xd4   : > { %2412 = shalt.err (!%p2409_p0)
}
  0xd5   : > { %s2413_s13 = scalar_lea.vmem %s378_s1, 16  ;;  %s2420_s9 = scalar_lea.vmem %s378_s1, 32 }
  0xd6   : > { %p2414_p5 = scmp.ne.s32.totalorder %s378_s1, %s2413_s13  ;;  %p2421_p13 = scmp.lt.s32.totalorder %s378_s1, %s378_s1 }
  0xd7   : > { %p2422_p2 = scmp.lt.s32.totalorder %s2420_s9, %s2413_s13 }
  0xd8   : > { %p2416_p1 = pnand %p2414_p5, %p3347_p8 }
  0xd9   : > { %p2423_p4 = por %p2422_p2, %p2421_p13 }
  0xda   : > { %p2417_p11 = pneg %p2416_p1 }
  0xdc   : > { %p2424_p12 = pnand %p2423_p4, %p2417_p11 }
  0xde   : > { %2427 = shalt.err (!%p2424_p12)
}
  0xdf   : > { %2102 = dma.hbm_to_vmem [thread:$0]  (!%p3348_p6), %s3291_s6, 16, %s378_s1, [#allocation15]  }
  0xe0   : > { %s2657_s5 = smov [#allocation19]   ;;  %s2658_s28 = smov [#allocation22]  }
  0xe1   : > { %s401_s22 = sshll.u32 %s2657_s5, 4  ;;  %s425_s3 = sshll.u32 %s2658_s28, 4  ;;  %s402_s22 = int_to_ptr.vmem [resolvable:$true] %s401_s22  ;;  %s426_s3 = int_to_ptr.vmem [resolvable:$true] %s425_s3 }
  0xe2   : > { %s2428_s0 = scalar_lea.hbm %s3293_s8, 16 }
  0xe3   : > { %p2429_p12 = scmp.ne.s32.totalorder %s3293_s8, %s2428_s0  ;;  %p2435_p10 = scmp.lt.u32.totalorder %s2428_s0, %s3293_s8 }
  0xe5   : > { %p2431_p7 = pnand %p2429_p12, %p3347_p8 }
  0xe7   : > { %p2432_p9 = pneg %p2431_p7 }
  0xe9   : > { %p2437_p3 = pnand %p2435_p10, %p2432_p9 }
  0xeb   : > { %2440 = shalt.err (!%p2437_p3)
}
  0xec   : > { %s2441_s1 = scalar_lea.vmem %s402_s22, 16  ;;  %s2448_s14 = scalar_lea.vmem %s402_s22, 32 }
  0xed   : > { %p2442_p0 = scmp.ne.s32.totalorder %s402_s22, %s2441_s1  ;;  %p2449_p11 = scmp.lt.s32.totalorder %s402_s22, %s402_s22 }
  0xee   : > { %p2450_p13 = scmp.lt.s32.totalorder %s2448_s14, %s2441_s1 }
  0xef   : > { %p2444_p5 = pnand %p2442_p0, %p3347_p8 }
  0xf0   : > { %p2451_p2 = por %p2450_p13, %p2449_p11 }
  0xf1   : > { %p2445_p1 = pneg %p2444_p5 }
  0xf3   : > { %p2452_p4 = pnand %p2451_p2, %p2445_p1 }
  0xf5   : > { %2455 = shalt.err (!%p2452_p4)
}
  0xf6   : > { %2108 = dma.hbm_to_vmem [thread:$0]  (!%p3348_p6), %s3293_s8, 16, %s402_s22, [#allocation18]  }
  0xf7   : > { %s2456_s0 = scalar_lea.hbm %s3295_s10, 16 }
  0xf8   : > { %p2457_p12 = scmp.ne.s32.totalorder %s3295_s10, %s2456_s0  ;;  %p2463_p10 = scmp.lt.u32.totalorder %s2456_s0, %s3295_s10 }
  0xfa   : > { %p2459_p7 = pnand %p2457_p12, %p3347_p8 }
  0xfc   : > { %p2460_p9 = pneg %p2459_p7 }
  0xfe   : > { %p2465_p3 = pnand %p2463_p10, %p2460_p9 }
 0x100   : > { %2468 = shalt.err (!%p2465_p3)
}
 0x101   : > { %s2469_s1 = scalar_lea.vmem %s426_s3, 16  ;;  %s2476_s22 = scalar_lea.vmem %s426_s3, 32 }
 0x102   : > { %p2470_p0 = scmp.ne.s32.totalorder %s426_s3, %s2469_s1  ;;  %p2477_p11 = scmp.lt.s32.totalorder %s426_s3, %s426_s3 }
 0x103   : > { %p2478_p13 = scmp.lt.s32.totalorder %s2476_s22, %s2469_s1 }
 0x104   : > { %p2472_p5 = pnand %p2470_p0, %p3347_p8 }
 0x105   : > { %p2479_p2 = por %p2478_p13, %p2477_p11 }
 0x106   : > { %p2473_p1 = pneg %p2472_p5 }
 0x108   : > { %p2480_p4 = pnand %p2479_p2, %p2473_p1 }
 0x10a   : > { %2483 = shalt.err (!%p2480_p4)
}
 0x10b   : > { %2114 = dma.hbm_to_vmem [thread:$0]  (!%p3348_p6), %s3295_s10, 16, %s426_s3, [#allocation21]  }
 0x10c   : > { %s3349_s2 = sld [smem:[#allocation37_spill]]  ;;  %s440_s0 = scalar_lea.vmem [#allocation5], %s2928_s12 }
 0x10d   : > { %s448_s27 = sshll.u32 %s440_s0, 4  ;;  %s3350_s9 = sld [smem:[#allocation39_spill]]  ;;  %s3055_s27 = int_to_ptr.vmem [resolvable:$true] %s448_s27 }
 0x10e   : > { %s3351_s1 = sand.u32 1, %s2634_s19   ;;  %p3352_p6 = scmp.ne.s32.totalorder %s3346_s7, 0 }
 0x10f   : > { %s437_s3 = scalar_lea.sflag [#allocation6], %s3351_s1 }
 0x112   : > { %s3052_s16 = scalar_lea.hbm %s3349_s2, %s2924_s26  ;;  %s2489_s11 = scalar_lea.hbm %s3349_s2, 256 }
 0x113   : > { %s3061_s21 = scalar_lea.hbm %s3350_s9, %s2924_s26  ;;  %s2484_s22 = scalar_lea.hbm %s3052_s16, 128 }
 0x114   : > { %p2485_p8 = scmp.ne.s32.totalorder %s3052_s16, %s2484_s22  ;;  %p2490_p9 = scmp.lt.u32.totalorder %s3052_s16, %s3349_s2 }
 0x115   : > { %p2491_p10 = scmp.lt.u32.totalorder %s2489_s11, %s2484_s22  ;;  %p2493_p0 = scmp.lt.u32.totalorder %s2484_s22, %s3052_s16 }
 0x116   : > { %p2487_p12 = pnand %p2485_p8, %p3352_p6 }
 0x117   : > { %p2492_p3 = por %p2491_p10, %p2490_p9 }
 0x118   : > { %p2488_p7 = pneg %p2487_p12 }
 0x119   : > { %p2494_p5 = por %p2493_p0, %p2492_p3 }
 0x11b   : > { %p2495_p1 = pnand %p2494_p5, %p2488_p7 }
 0x11d   : > { %2498 = shalt.err (!%p2495_p1)
}
 0x11e   : > { %s2499_s26 = scalar_lea.vmem %s3055_s27, 128  ;;  %s2659_s24 = smov [#allocation5]  }
 0x11f   : > { %p2500_p11 = scmp.ne.s32.totalorder %s3055_s27, %s2499_s26  ;;  %s2504_s13 = sshll.u32 %s2659_s24, 4  ;;  %s2505_s13 = int_to_ptr.vmem [resolvable:$false] %s2504_s13 }
 0x120   : > { %s2506_s1 = scalar_lea.vmem %s2505_s13, 256  ;;  %p2507_p4 = scmp.lt.s32.totalorder %s3055_s27, %s2505_s13 }
 0x121   : > { %p2502_p13 = pnand %p2500_p11, %p3352_p6  ;;  %p2508_p8 = scmp.lt.s32.totalorder %s2506_s1, %s2499_s26 }
 0x123   : > { %p2503_p2 = pneg %p2502_p13  ;;  %p2509_p12 = por %p2508_p8, %p2507_p4 }
 0x125   : > { %p2510_p9 = pnand %p2509_p12, %p2503_p2 }
 0x127   : > { %2513 = shalt.err (!%p2510_p9)
}
 0x128   : > { %p3353_p7 = scmp.ne.s32.totalorder %s3344_s29, 0  ;;  %s477_s22 = scalar_lea.vmem [#allocation10], %s2928_s12 }
 0x129   : > { %s484_s14 = sshll.u32 %s477_s22, 4  ;;  %s2514_s5 = scalar_lea.hbm %s3061_s21, 128  ;;  %s485_s14 = int_to_ptr.vmem [resolvable:$true] %s484_s14 }
 0x12a   : > { %2118 = dma.hbm_to_vmem [thread:$0]  (!%p3353_p7), %s3052_s16, 128, %s3055_s27, %s437_s3  }
 0x12b   : > { %p2515_p10 = scmp.ne.s32.totalorder %s3061_s21, %s2514_s5  ;;  %s2519_s0 = scalar_lea.hbm %s3350_s9, 256 }
 0x12c   : > { %p2520_p5 = scmp.lt.u32.totalorder %s3061_s21, %s3350_s9  ;;  %p2521_p1 = scmp.lt.u32.totalorder %s2519_s0, %s2514_s5 }
 0x12d   : > { %p2517_p3 = pnand %p2515_p10, %p3352_p6  ;;  %p2523_p13 = scmp.lt.u32.totalorder %s2514_s5, %s3061_s21 }
 0x12e   : > { %p2522_p11 = por %p2521_p1, %p2520_p5 }
 0x12f   : > { %p2518_p0 = pneg %p2517_p3 }
 0x130   : > { %p2524_p2 = por %p2523_p13, %p2522_p11 }
 0x132   : > { %p2525_p4 = pnand %p2524_p2, %p2518_p0 }
 0x134   : > { %2528 = shalt.err (!%p2525_p4)
}
 0x135   : > { %s2529_s12 = scalar_lea.vmem %s485_s14, 128  ;;  %s2660_s16 = smov [#allocation10]  }
 0x136   : > { %p2530_p8 = scmp.ne.s32.totalorder %s485_s14, %s2529_s12  ;;  %s2534_s27 = sshll.u32 %s2660_s16, 4  ;;  %s2535_s27 = int_to_ptr.vmem [resolvable:$false] %s2534_s27 }
 0x137   : > { %s2536_s3 = scalar_lea.vmem %s2535_s27, 256  ;;  %p2537_p10 = scmp.lt.s32.totalorder %s485_s14, %s2535_s27 }
 0x138   : > { %p2532_p12 = pnand %p2530_p8, %p3352_p6  ;;  %p2538_p3 = scmp.lt.s32.totalorder %s2536_s3, %s2529_s12 }
 0x13a   : > { %p2533_p9 = pneg %p2532_p12  ;;  %p2539_p7 = por %p2538_p3, %p2537_p10 }
 0x13c   : > { %p2540_p1 = pnand %p2539_p7, %p2533_p9 }
 0x13e   : > { %2543 = shalt.err (!%p2540_p1)
}
 0x13f   : > { %p3354_p5 = scmp.ne.s32.totalorder %s3344_s29, 0  ;;  %s3355_s13 = sld [smem:[#allocation34_spill]] }
 0x141   : > { %2124 = dma.hbm_to_vmem [thread:$0]  (!%p3354_p5), %s3061_s21, 128, %s485_s14, %s2946_s25  }
 0x145   : > { %p3356_p0 = scmp.ne.s32.totalorder %s3355_s13, 0 }
 0x146   : > { %s3108_s7 = sand.u32 (!%p3356_p0), 1, %s2630_s18   ;;  %p3357_p6 = scmp.ne.s32.totalorder (!%p3356_p0), %s3340_s15, 0 }
 0x147   : > { %493 = sbr.rel (%p3356_p0) target bundleno = 2271 (0x8df), region = 64  ;;  %s3111_s1 = sshll.u32 (!%p3356_p0), %s3108_s7, 3 }
 0x148   : > { %s496_s22 = scalar_lea.sflag (!%p3356_p0), [#allocation6], %s3108_s7  ;;  %s499_s5 = scalar_lea.vmem (!%p3356_p0), [#allocation5], %s3111_s1 }
 0x14e   : > { %2597 = dma.done.wait (%p3357_p6), %s496_s22, 128  }
 0x14f   : > { %2599 = vsyncadd (%p3357_p6), %s496_s22, 4294967168  ;;  %s504_s29 = sand.u32 1, %s2762_s23   ;;  %s508_s21 = scalar_lea.vmem [#allocation8], %s3111_s1 }
 0x150   : > { %s505_s25 = scalar_lea.sflag [#allocation9], %s504_s29 }
 0x151   : > { %2601 = dma.done.wait (%p3357_p6), %s505_s25, 256  }
 0x152   : > { %2603 = vsyncadd (%p3357_p6), %s505_s25, 4294967040  ;;  %s517_s14 = scalar_lea.vmem [#allocation10], %s3111_s1  ;;  %p3358_p7 = scmp.eq.s32.totalorder %s2762_s23, 0 }
 0x154   : > { %2605 = dma.done.wait (%p3358_p7), [#allocation12], 528   ;;  %p3359_p11 = pmov %p3358_p7 }
 0x155   : > { %p3360_p13 = pmov %p3358_p7 }
 0x156   : > { %2607 = vsyncadd (%p3359_p11), [#allocation12], 4294966768 }
 0x157   : > { %2609 = dma.done.wait (%p3360_p13), [#allocation15], 528   ;;  %p3361_p2 = pmov %p3358_p7 }
 0x159   : > { %2611 = vsyncadd (%p3361_p2), [#allocation15], 4294966768  ;;  %p3362_p4 = pmov %p3361_p2 }
 0x15a   : > { %p3363_p8 = pmov %p3361_p2 }
 0x15b   : > { %2613 = dma.done.wait (%p3362_p4), [#allocation18], 528  }
 0x15c   : > { %2615 = vsyncadd (%p3363_p8), [#allocation18], 4294966768  ;;  %p3364_p12 = pmov %p3361_p2 }
 0x15d   : > { %p3365_p9 = pmov %p3361_p2 }
 0x15e   : > { %2617 = dma.done.wait (%p3364_p12), [#allocation21], 528  }
 0x15f   : > { %2619 = vsyncadd (%p3365_p9), [#allocation21], 4294966768  ;;  %v2661_v0 = vmov 0.0|0.0   ;;  %vm2662_vm0 = vmmov 0   ;;  %v2663_v1 = vmov 0.0   ;;  %v603_v2 = vld [vmem:[#allocation14] sm:$0xff] }
 0x160   : > { %2026 = vmatprep.subr.bf16.mxu0 %v2661_v0  ;;  %1950 = vmatprep.mubr.msk.f32.mxu0 %vm2662_vm0, %v2663_v1  ;;  %v604_v3 = vld [vmem:[#allocation14 + $0x8] sm:$0xff]  ;;  %v605_v4 = vld [vmem:[#allocation14 + $0x10] sm:$0xff]  ;;  %v606_v6 = vld [vmem:[#allocation14 + $0x18] sm:$0xff]  ;;  %vm614_vm1 = vcmask 261120   ;;  %vm864_vm2 = vcmask 64512   ;;  %s2664_s23 = smov 120  }
 0x161   : > { %2032 = vmatprep.subr.bf16.mxu1 %v2661_v0  ;;  %1961 = vmatprep.mubr.msk.f32.mxu1 %vm2662_vm0, %v2663_v1  ;;  %v2027_v5 = vpack.c.bf16 %v604_v3, %v603_v2  ;;  %v2030_v7 = vpack.c.bf16 %v606_v6, %v605_v4  ;;  %v690_v8 = vld [vmem:[#allocation17] sm:$0xff]  ;;  %v691_v9 = vld [vmem:[#allocation17 + $0x8] sm:$0xff]  ;;  %v779_v16 = vld [vmem:[#allocation11 + $0x18] sm:$0xff]  ;;  %s2665_s15 = smov 112   ;;  %s2666_s11 = smov 104   ;;  %vm1199_vm3 = vcmask 130112  }
 0x162   : > { %v776_v10 = vld [vmem:[#allocation11] sm:$0xff]  ;;  %v777_v11 = vld [vmem:[#allocation11 + $0x8] sm:$0xff]  ;;  %v2033_v12 = vpack.c.bf16 %v691_v9, %v690_v8  ;;  %v778_v15 = vld [vmem:[#allocation11 + $0x10] sm:$0xff]  ;;  %s2667_s28 = smov 8   ;;  %s2668_s0 = smov 16   ;;  %vm1374_vm4 = vcmask 195712  }
 0x163   : > { %2028 = vmatpush3.bf16.msra.mxu0 %v2027_v5  ;;  %v602_v13 = vld [vmem:[%s508_s21] sm:$0xff]  ;;  %v2039_v14 = vpack.c.bf16 %v777_v11, %v776_v10  ;;  %v2042_v17 = vpack.c.bf16 %v779_v16, %v778_v15  ;;  %v775_v18 = vld [vmem:[%s499_s5] sm:$0xff]  ;;  %s3366_s26 = sld [smem:[#allocation31_spill]]  ;;  %s2669_s24 = smov 24   ;;  %vm1549_vm5 = vcmask 261312  }
 0x164   : > { %2029 = vmatprep.subr.bf16.mxu0 %v2661_v0  ;;  %2034 = vmatpush3.bf16.msra.mxu1 %v2033_v12  ;;  %v692_v19 = vld [vmem:[#allocation17 + $0x10] sm:$0xff]  ;;  %v693_v20 = vld [vmem:[#allocation17 + $0x18] sm:$0xff]  ;;  %v1884_v33 = vld [vmem:[#allocation19] ss:$0 sm:$0xff]  ;;  %s597_s16 = scalar_lea.vmem [#allocation23], %s3111_s1  ;;  %s3367_s22 = sld [smem:[#allocation44_spill]] }
 0x165   : > { %2035 = vmatprep.subr.bf16.mxu1 %v2661_v0  ;;  %v2036_v21 = vpack.c.bf16 %v693_v20, %v692_v19  ;;  %v689_v22 = vld [vmem:[%s517_s14] sm:$0xff]  ;;  %v1882_v23 = vld [vmem:[#allocation16] ss:$0 sm:$0xff]  ;;  %v1886_v27 = vld [vmem:[#allocation13] ss:$0 sm:$0xff]  ;;  %s1652_s27 = sshll.u32 %s597_s16, 4  ;;  %s3237_s27 = int_to_ptr.vmem [resolvable:$true] %s1652_s27 }
 0x166   : > { %s1638_s25 = scalar_lea.sflag [#allocation7], %s3108_s7  ;;  %s2544_s21 = scalar_lea.vmem %s3237_s27, 128 }
 0x167   : > { %2031 = vmatpush3.bf16.msra.mxu0 %v2030_v7  ;;  %p2545_p10 = scmp.ne.s32.totalorder %s3237_s27, %s2544_s21  ;;  %p3369_p3 = scmp.ne.s32.totalorder %s3341_s20, 0 }
 0x168   : > { %2038 = vmatprep.subr.bf16.mxu0 %v2661_v0  ;;  %2037 = vmatpush3.bf16.msra.mxu1 %v2036_v21  ;;  %s2670_s1 = smov [#allocation23]  }
 0x169   : > { %1975 = vmatprep.subr.mxu1 %v2663_v1  ;;  %s1903_s12 = sshll.u32 %s3366_s26, 7  ;;  %p2546_p1 = pnand %p2545_p10, %p3369_p3 }
 0x16a   : > { %1951 = vmatmul.mubr.msk.f32.vlgmr.msra.gmra.mrb[0].mxu0 %vm614_vm1, %v602_v13  ;;  %s3368_s5 = smov %s3367_s22  ;;  %s3235_s29 = scalar_lea.hbm %s3367_s22, %s1903_s12 }
 0x16b   : > { %2040 = vmatpush3.bf16.msra.mxu0 %v2039_v14  ;;  %1972 = vmatprep.mubr.msk.f32.mxu0 %vm2662_vm0, %v2663_v1  ;;  %p2547_p5 = pneg %p2546_p1  ;;  %s2548_s14 = sshll.u32 %s2670_s1, 4  ;;  %s2549_s14 = int_to_ptr.vmem [resolvable:$false] %s2548_s14 }
 0x16c   : > { %2041 = vmatprep.subr.bf16.mxu0 %v2661_v0  ;;  %1962 = vmatmul.mubr.msk.f32.vlgmr.msra.gmra.mrb[0].mxu1 %vm614_vm1, %v689_v22  ;;  %p2551_p0 = scmp.lt.s32.totalorder %s3237_s27, %s2549_s14 }
 0x16d   : > { %1977 = vmatprep.mubr.msk.f32.mxu1 %vm2662_vm0, %v2663_v1 }
 0x16f   : > { %2043 = vmatpush3.bf16.msra.mxu0 %v2042_v17 }
 0x170   : > { %1995 = vmatprep.subr.mxu0 %v2663_v1 }
 0x172   : > { %1973 = vmatmul.mubr.msk.f32.vlgmr.msra.gmra.mrb[2].mxu0 %vm614_vm1, %v775_v18 }
 0x173   : > { %1997 = vmatprep.mubr.msk.f32.mxu0 %vm2662_vm0, %v2663_v1 }
 0x23d   : > { %v684_v24 = vpop.f32.mrb[0].mxu0 }
 0x23e   : > { %v685_v25 = vadd.f32 %v1882_v23, %v684_v24  ;;  %v1952_v26 = vpop.f32.mrb[1].mxu0 }
 0x23f   : > { %v770_v34 = vpop.f32.mrb[0].mxu1 }
 0x240   : > { %688 = vst.msk [vmem:[#allocation2] sm:$0xff] %vm614_vm1, %v685_v25  ;;  %v771_v35 = vadd.f32 %v1884_v33, %v770_v34  ;;  %v1963_v36 = vpop.f32.mrb[1].mxu1  ;;  %v1554_v34 = vld [vmem:[#allocation20 + $0x10] sm:$0xff] }
 0x242   : > { %774 = vst.msk [vmem:[#allocation3] sm:$0xff] %vm614_vm1, %v771_v35  ;;  %v1555_v35 = vld [vmem:[#allocation20 + $0x18] sm:$0xff] }
 0x243   : > { %v2048_v36 = vpack.c.bf16 %v1555_v35, %v1554_v34 }
 0x245   : > { %v857_v28 = vpop.f32.mrb[2].mxu0 }
 0x246   : > { %v858_v29 = vadd.f32 %v1886_v27, %v857_v28  ;;  %v1974_v30 = vpop.f32.mrb[3].mxu0 }
 0x247   : > { %v1026_v31 = vld [vmem:[#allocation2] sm:$0xff] }
 0x248   : > { %v861_v32 = vmul.f32 0.35355338, %v858_v29  ;;  %1031 = vrot.lane.b32.xlu1 %v1026_v31, %s2664_s23  ;;  %1976 = vmatpush3.xpose.msk.msra.mxu1 %vm864_vm2, %v1026_v31 }
 0x249   : > { %1980 = vmatprep.subr.mxu1 %v2663_v1  ;;  %v3181_v37 = vld [vmem:[#allocation3] sm:$0xff] }
 0x24b   : > { %1978 = vmatmul.mubr.msk.f32.vlgmr.msra.gmra.mrb[2].mxu1 %vm864_vm2, %v861_v32 }
 0x24c   : > { %1028 = vrot.lane.b32.xlu1 %v861_v32, %s2664_s23  ;;  %1982 = vmatprep.mubr.msk.f32.mxu1 %vm2662_vm0, %v2663_v1 }
 0x24d   : > { %1981 = vmatpush3.msra.mxu1 %v3181_v37 }
 0x24e   : > { %1985 = vmatprep.subr.mxu1 %v2663_v1 }
 0x250   : > { %1203 = vrot.lane.b32.xlu1 %v861_v32, %s2665_s15 }
 0x254   : > { %1381 = vrot.lane.b32.xlu1 %v1026_v31, %s2666_s11 }
 0x258   : > { %1378 = vrot.lane.b32.xlu1 %v861_v32, %s2666_s11  ;;  %v1553_v32 = vld [vmem:[#allocation20 + $0x8] sm:$0xff] }
 0x2ba   : > { %v1032_v46 = vpop.permute.xlu1 %1031 }
 0x2be   : > { %v1029_v47 = vpop.permute.xlu1 %1028 }
 0x2c2   : > { %v1204_v48 = vpop.permute.xlu1 %1203 }
 0x2c6   : > { %v1382_v51 = vpop.permute.xlu1 %1381 }
 0x2ca   : > { %v1379_v53 = vpop.permute.xlu1 %1378 }
 0x31e   : > { %v937_v38 = vpop.f32.mrb[2].mxu1 }
 0x31f   : > { %v1979_v39 = vpop.f32.mrb[3].mxu1  ;;  %v941_v40 = vsel %vm864_vm2, %v937_v38, -inf }
 0x320   : > { %942 = vmax.xlane.f32.xlu0 %v941_v40 }
 0x3ad   : > { %v943_v41 = vpop.xlane.xlu0 %942 }
 0x3ae   : > { %v944_v42 = vsub.f32 %v937_v38, %v943_v41 }
 0x3b0   : > { %v945_v43 = vmul.f32 1.442695, %v944_v42 }
 0x3b2   : > { %2214 = vpow2.f32 %v945_v43 }
 0x3bc   : > { %v2215_v44 = vpop.eup %2214 }
 0x3bd   : > { %v947_v45 = vsel %vm864_vm2, %v2215_v44, 0.0 }
 0x3be   : > { %948 = vadd.xlane.f32.xlu0 %v947_v45  ;;  %v1900_v45 = vld [vmem:[#allocation22] ss:$0 sm:$0xff] }
 0x3d4   : > { %1206 = vrot.lane.b32.xlu0 %v1026_v31, %s2665_s15  ;;  %v1552_v31 = vld [vmem:[#allocation20] sm:$0xff] }
 0x3d5   : > { %v2045_v33 = vpack.c.bf16 %v1553_v32, %v1552_v31 }
 0x44b   : > { %v949_v49 = vpop.xlane.xlu0 %948 }
 0x44c   : > { %2216 = vrcp.f32 %v949_v49 }
 0x44f   : > { %v1207_v50 = vpop.permute.xlu0 %1206 }
 0x450   : > { %1996 = vmatpush3.xpose.msk.msra.mxu0 %vm864_vm2, %v1207_v50 }
 0x451   : > { %2005 = vmatprep.subr.mxu0 %v2663_v1 }
 0x453   : > { %1998 = vmatmul.mubr.msk.f32.vlgmr.msra.gmra.mrb[4].mxu0 %vm864_vm2, %v1204_v48 }
 0x454   : > { %2006 = vmatpush3.xpose.msk.msra.mxu0 %vm864_vm2, %v1382_v51  ;;  %2007 = vmatprep.mubr.msk.f32.mxu0 %vm2662_vm0, %v2663_v1 }
 0x455   : > { %2044 = vmatprep.subr.bf16.mxu0 %v2661_v0 }
 0x456   : > { %v2217_v52 = vpop.eup %2216 }
 0x457   : > { %v951_v54 = vmul.f32 %v2217_v52, %v2215_v44  ;;  %2008 = vmatmul.mubr.msk.f32.vlgmr.msra.gmra.mrb[6].mxu0 %vm864_vm2, %v1379_v53 }
 0x458   : > { %2023 = vmatprep.mubr.msk.f32.mxu0 %vm2662_vm0, %v2663_v1  ;;  %2046 = vmatpush3.bf16.msra.mxu0 %v2045_v33 }
 0x459   : > { %1983 = vmatmul.mubr.msk.f32.vlgmr.msra.gmra.mrb[4].mxu1 %vm864_vm2, %v951_v54  ;;  %2047 = vmatprep.subr.bf16.mxu0 %v2661_v0 }
 0x45a   : > { %1986 = vmatpush3.xpose.msk.msra.mxu1 %vm864_vm2, %v1032_v46  ;;  %1987 = vmatprep.mubr.msk.f32.mxu1 %vm2662_vm0, %v2663_v1 }
 0x45b   : > { %1990 = vmatprep.subr.mxu1 %v2663_v1 }
 0x45c   : > { %2049 = vmatpush3.bf16.msra.mxu0 %v2048_v36 }
 0x45d   : > { %1988 = vmatmul.mubr.msk.f32.vlgmr.msra.gmra.mrb[6].mxu1 %vm864_vm2, %v1029_v47 }
 0x45e   : > { %1992 = vmatprep.mubr.msk.f32.mxu1 %vm2662_vm0, %v2663_v1 }
 0x526   : > { %v1278_v55 = vpop.f32.mrb[4].mxu0 }
 0x527   : > { %v1999_v56 = vpop.f32.mrb[5].mxu0  ;;  %v1282_v57 = vsel %vm864_vm2, %v1278_v55, -inf }
 0x528   : > { %1283 = vmax.xlane.f32.xlu0 %v1282_v57 }
 0x52a   : > { %v1453_v58 = vpop.f32.mrb[6].mxu0 }
 0x52b   : > { %v2009_v59 = vpop.f32.mrb[7].mxu0  ;;  %v1457_v3 = vsel %vm864_vm2, %v1453_v58, -inf }
 0x52c   : > { %v1021_v60 = vpop.f32.mrb[4].mxu1 }
 0x52d   : > { %1025 = vst.msk [vmem:[#allocation4] sm:$0xff] %vm864_vm2, %v1021_v60  ;;  %v1984_v61 = vpop.f32.mrb[5].mxu1 }
 0x530   : > { %v1103_v62 = vpop.f32.mrb[6].mxu1 }
 0x531   : > { %v1989_v63 = vpop.f32.mrb[7].mxu1  ;;  %v1107_v2 = vsel %vm864_vm2, %v1103_v62, -inf }
 0x532   : > { %1108 = vmax.xlane.f32.xlu1 %v1107_v2 }
 0x536   : > { %1458 = vmax.xlane.f32.xlu1 %v1457_v3 }
 0x5b5   : > { %v1284_v4 = vpop.xlane.xlu0 %1283 }
 0x5b6   : > { %v1285_v5 = vsub.f32 %v1278_v55, %v1284_v4 }
 0x5b8   : > { %v1286_v6 = vmul.f32 1.442695, %v1285_v5 }
 0x5ba   : > { %2218 = vpow2.f32 %v1286_v6 }
 0x5bf   : > { %v1109_v7 = vpop.xlane.xlu1 %1108 }
 0x5c0   : > { %v1110_v15 = vsub.f32 %v1103_v62, %v1109_v7 }
 0x5c2   : > { %v1111_v16 = vmul.f32 1.442695, %v1110_v15 }
 0x5c3   : > { %v1459_v8 = vpop.xlane.xlu1 %1458 }
 0x5c4   : > { %v2219_v9 = vpop.eup %2218  ;;  %v1460_v10 = vsub.f32 %v1453_v58, %v1459_v8 }
 0x5c5   : > { %v1288_v11 = vsel %vm864_vm2, %v2219_v9, 0.0 }
 0x5c6   : > { %v1461_v12 = vmul.f32 1.442695, %v1460_v10  ;;  %1289 = vadd.xlane.f32.xlu0 %v1288_v11 }
 0x5c8   : > { %2220 = vpow2.f32 %v1461_v12 }
 0x5c9   : > { %2222 = vpow2.f32 %v1111_v16 }
 0x5d2   : > { %v2221_v13 = vpop.eup %2220 }
 0x5d3   : > { %v1463_v14 = vsel %vm864_vm2, %v2221_v13, 0.0  ;;  %v2223_v17 = vpop.eup %2222 }
 0x5d4   : > { %1464 = vadd.xlane.f32.xlu1 %v1463_v14  ;;  %v1113_v18 = vsel %vm864_vm2, %v2223_v17, 0.0 }
 0x5dc   : > { %1119 = vrot.lane.b32.xlu0 %v3181_v37, %s2664_s23  ;;  %s2550_s23 = scalar_lea.vmem %s2549_s14, 256 }
 0x5dd   : > { %p2552_p6 = scmp.lt.s32.totalorder %s2550_s23, %s2544_s21 }
 0x5df   : > { %p2553_p7 = por %p2552_p6, %p2551_p0 }
 0x5e1   : > { %p2554_p11 = pnand %p2553_p7, %p2547_p5 }
 0x5e5   : > { %1294 = vrot.lane.b32.xlu1 %v3181_v37, %s2665_s15 }
 0x609   : > { %1114 = vadd.xlane.f32.xlu1 %v1113_v18 }
 0x61a   : > { %1469 = vrot.lane.b32.xlu1 %v3181_v37, %s2666_s11 }
 0x653   : > { %v1290_v19 = vpop.xlane.xlu0 %1289 }
 0x657   : > { %v1120_v20 = vpop.permute.xlu0 %1119 }
 0x658   : > { %1991 = vmatpush3.msra.mxu1 %v1120_v20 }
 0x659   : > { %2000 = vmatprep.subr.mxu1 %v2663_v1 }
 0x661   : > { %v1465_v21 = vpop.xlane.xlu1 %1464 }
 0x665   : > { %v1295_v22 = vpop.permute.xlu1 %1294 }
 0x696   : > { %v1115_v23 = vpop.xlane.xlu1 %1114 }
 0x697   : > { %2224 = vrcp.f32 %v1115_v23 }
 0x698   : > { %2226 = vrcp.f32 %v1290_v19 }
 0x699   : > { %2228 = vrcp.f32 %v1465_v21 }
 0x69a   : > { %v1470_v29 = vpop.permute.xlu1 %1469 }
 0x6a1   : > { %v2225_v24 = vpop.eup %2224 }
 0x6a2   : > { %v1117_v25 = vmul.f32 %v2225_v24, %v2223_v17  ;;  %v2227_v26 = vpop.eup %2226 }
 0x6a3   : > { %v1292_v27 = vmul.f32 %v2227_v26, %v2219_v9  ;;  %v2229_v28 = vpop.eup %2228 }
 0x6a4   : > { %1993 = vmatmul.mubr.msk.f32.vlgmr.msra.gmra.mrb[8].mxu1 %vm864_vm2, %v1117_v25  ;;  %v1467_v30 = vmul.f32 %v2229_v28, %v2221_v13 }
 0x6a5   : > { %2001 = vmatpush3.msra.mxu1 %v1295_v22  ;;  %2002 = vmatprep.mubr.msk.f32.mxu1 %vm2662_vm0, %v2663_v1 }
 0x6a6   : > { %2010 = vmatprep.subr.mxu1 %v2663_v1 }
 0x6a8   : > { %2003 = vmatmul.mubr.msk.f32.vlgmr.msra.gmra.mrb[10].mxu1 %vm864_vm2, %v1292_v27 }
 0x6a9   : > { %2011 = vmatpush3.msra.mxu1 %v1470_v29  ;;  %2012 = vmatprep.mubr.msk.f32.mxu1 %vm2662_vm0, %v2663_v1 }
 0x6ac   : > { %2013 = vmatmul.mubr.msk.f32.vlgmr.msra.gmra.mrb[12].mxu1 %vm864_vm2, %v1467_v30 }
 0x777   : > { %v1191_v37 = vpop.f32.mrb[8].mxu1 }
 0x778   : > { %1196 = vrot.lane.b32.xlu0 %v1191_v37, %s2667_s28  ;;  %v1994_v38 = vpop.f32.mrb[9].mxu1 }
 0x77b   : > { %v1366_v39 = vpop.f32.mrb[10].mxu1 }
 0x77c   : > { %1371 = vrot.lane.b32.xlu1 %v1366_v39, %s2668_s0  ;;  %v2004_v1 = vpop.f32.mrb[11].mxu1 }
 0x77f   : > { %v1541_v40 = vpop.f32.mrb[12].mxu1 }
 0x780   : > { %1546 = vrot.lane.b32.xlu0 %v1541_v40, %s2669_s24  ;;  %v2014_v41 = vpop.f32.mrb[13].mxu1 }
 0x7ea   : > { %v1197_v42 = vpop.permute.xlu0 %1196 }
 0x7eb   : > { %1200 = vst.msk [vmem:[#allocation4] sm:$0xff] %vm1199_vm3, %v1197_v42 }
 0x7ee   : > { %v1372_v0 = vpop.permute.xlu1 %1371 }
 0x7ef   : > { %1375 = vst.msk [vmem:[#allocation4] sm:$0xff] %vm1374_vm4, %v1372_v0 }
 0x7f2   : > { %v1547_v43 = vpop.permute.xlu0 %1546 }
 0x7f3   : > { %1550 = vst.msk [vmem:[#allocation4] sm:$0xff] %vm1549_vm5, %v1547_v43 }
 0x7fa   : > { %v1551_v44 = vld [vmem:[#allocation4] sm:$0xff] }
 0x7fb   : > { %2024 = vmatmul.mubr.msk.f32.vlgmr.msra.gmra.mrb[8].mxu0 %vm614_vm1, %v1551_v44 }
 0x8ce   : > { %v1632_v46 = vpop.f32.mrb[8].mxu0 }
 0x8cf   : > { %v1633_v47 = vadd.f32 %v1900_v45, %v1632_v46  ;;  %v2025_v48 = vpop.f32.mrb[9].mxu0 }
 0x8d1   : > { %1636 = vst.msk [vmem:[%s597_s16] sm:$0xff] %vm614_vm1, %v1633_v47 }
 0x8d2   : > { %2557 = shalt.err (!%p2554_p11)
}
 0x8d3   : > { %s2558_s7 = scalar_lea.hbm %s3235_s29, 128  ;;  %s2562_s28 = scalar_lea.hbm %s3368_s5, 256 }
 0x8d4   : > { %p2559_p13 = scmp.ne.s32.totalorder %s3235_s29, %s2558_s7  ;;  %p2563_p8 = scmp.lt.u32.totalorder %s3235_s29, %s3368_s5 }
 0x8d5   : > { %p2564_p12 = scmp.lt.u32.totalorder %s2562_s28, %s2558_s7  ;;  %p2566_p10 = scmp.lt.u32.totalorder %s2558_s7, %s3235_s29 }
 0x8d6   : > { %p2560_p2 = pnand %p2559_p13, %p3369_p3 }
 0x8d7   : > { %p2565_p9 = por %p2564_p12, %p2563_p8 }
 0x8d8   : > { %p2561_p4 = pneg %p2560_p2 }
 0x8d9   : > { %p2567_p1 = por %p2566_p10, %p2565_p9 }
 0x8db   : > { %p2568_p5 = pnand %p2567_p1, %p2561_p4 }
 0x8dd   : > { %2571 = shalt.err (!%p2568_p5)
}
 0x8de   : > { %2088 = dma.vmem_to_hbm [thread:$0]  (%p3369_p3), %s3237_s27, 128, %s3235_s29, %s1638_s25  }
 0x8df PF: > { %s3370_s24 = sld [smem:[#allocation33_spill]]  ;;  %s1664_s12 = sand.u32 1, %s2626_s17  }
 0x8e0   : > { %p3371_p0 = scmp.ne.s32.totalorder %s3343_s30, 0  ;;  %s1665_s16 = scalar_lea.sflag [#allocation7], %s1664_s12 }
 0x8e5   : > { %p3372_p6 = scmp.ge.s32.totalorder %s3370_s24, 2 }
 0x8e7   : > { %p2126_p7 = pnand %p3372_p6, %p3371_p0 }
 0x8e9   : > { %2621 = dma.done.wait (!%p2126_p7), %s1665_s16, 128  }
 0x8ea   : > { %2623 = vsyncadd (!%p2126_p7), %s1665_s16, 4294967168  ;;  %s34_s22 = sadd.s32 1, %s3370_s24   ;;  %s3373_s20 = sld [smem:[#allocation36_spill]] }
 0x8eb   : > { %p31_p11 = scmp.ge.s32.totalorder %s34_s22, 4   ;;  %s3374_s3 = sld [smem:[#allocation32_spill]] }
 0x8ec   : > { %s3375_s21 = sld [smem:[#allocation35_spill]]  ;;  %s3376_s17 = smov %s2630_s18 }
 0x8ed   : > { %s3377_s18 = smov %s2634_s19  ;;  %33 = sbr.rel (!%p31_p11) target bundleno = 21 (0x15), region = 169 }
 0x8f0   : > { %s3378_s19 = smov %s3373_s20 }
 0x8f1   : > { %s3379_s20 = smov %s3374_s3 }
 0x8f4   :  { %1670 = vsyncpa [#allocation6], 1 }
 0x8f5   :  { %1672 = vsyncpa [#allocation6 + $0x1], 1 }
 0x8f6   :  { %1673 = vsyncpa [#allocation9], 1 }
 0x8f7   :  { %1675 = vsyncpa [#allocation9 + $0x1], 1 }
 0x8f8   :  { %1676 = vsyncpa [#allocation12], 1 }
 0x8f9   :  { %1677 = vsyncpa [#allocation15], 1 }
 0x8fa   :  { %1678 = vsyncpa [#allocation18], 1 }
 0x8fb   :  { %1679 = vsyncpa [#allocation21], 1 }
 0x8fc   :  { %1680 = vsyncpa [#allocation7], 1 }
 0x8fd   :  { %1682 = vsyncpa [#allocation7 + $0x1], 1 }

</bundles_post_ra>
